<compile_context>
chip_gen: v6e
topology: v6e:2x2x1
jax: 0.10.0
libtpu: 0.0.40
codegen_flags: <defaults>
</compile_context>

<pallas_src>
import jax
import jax.numpy as jnp
import numpy as np
from jax.experimental import pallas as pl
from jax.experimental.pallas import tpu as pltpu


def _make_kernel(seq_len: int, num_layers: int, hidden_dim: int,
                 batch_p: int, embedding_dim: int):
    """Builds the Pallas kernel body for a fixed (static) configuration."""
    H = hidden_dim
    T = seq_len
    B = batch_p
    E = embedding_dim
    L = num_layers

    def kernel(*refs):
        # Ref layout (static Python indexing, resolved at trace time):
        mask_ref = refs[0]                    # (T, B, 1)   f32  one-hot last step
        x_ref = refs[1]                       # (T*B, E)    f32  time-major, flat
        w_ih = refs[2:2 + L]                  # layer 0: (E,4H); layers>=1: (H,4H)
        w_hh = refs[2 + L:2 + 2 * L]          # each (H, 4H)
        w_out = refs[2 + 2 * L]               # (H, n_labels)
        b_out = refs[3 + 2 * L]               # (1, n_labels)
        out_ref = refs[4 + 2 * L]             # (B, n_labels)

        # Hoisted layer-0 input projection for ALL timesteps: one
        # (T*B, E) x (E, 4H) matmul, result kept in vregs (8 vregs here).
        proj0 = jnp.dot(x_ref[...], w_ih[0][...],
                        preferred_element_type=jnp.float32)       # (T*B, 4H)

        # Load weights once (hoisted out of the unrolled recurrence).
        w_hh_v = [w_hh[l][...] for l in range(L)]
        w_ih_v = [None] + [w_ih[l][...] for l in range(1, L)]
        mask_all = mask_ref[...]                                  # (T, B, 1)

        def lstm_cell(gates, c_prev):
            # gate order i, f, g, o (PyTorch convention), gates: (B, 4H).
            # One full-vreg sigmoid + one full-vreg tanh (2 EUP pushes),
            # then slice; cheaper than 4 quarter-width transcendentals.
            sg = jax.nn.sigmoid(gates)
            th = jnp.tanh(gates)
            i_g = sg[:, 0 * H:1 * H]
            f_g = sg[:, 1 * H:2 * H]
            g_g = th[:, 2 * H:3 * H]
            o_g = sg[:, 3 * H:4 * H]
            c_new = f_g * c_prev + i_g * g_g
            h_new = o_g * jnp.tanh(c_new)
            return h_new, c_new

        # init_hidden(): zeros for h0 / c0 / decoded accumulator, all carried
        # as values (vregs) across the unrolled steps — no VMEM round trips.
        h = [jnp.zeros((B, H), jnp.float32) for _ in range(L)]
        c = [jnp.zeros((B, H), jnp.float32) for _ in range(L)]
        dec = jnp.zeros((B, H), jnp.float32)

        # Fully unrolled, straight-line recurrence (T is static and small) so
        # the scheduler can overlap layer l(t) with layer l-1(t+1).  Timesteps
        # past a row's length see zero inputs and never touch `dec`.
        for t in range(T):
            # Layer 0: recurrent projection only (input part precomputed);
            # static slice start t*B is a multiple of 8 -> sublane-aligned.
            gates0 = proj0[t * B:(t + 1) * B, :] + jnp.dot(
                h[0], w_hh_v[0], preferred_element_type=jnp.float32)
            h[0], c[0] = lstm_cell(gates0, c[0])
            inp = h[0]

            # Layers >= 1: two small dots, no cross-lane concat.
            for l in range(1, L):
                gates = (jnp.dot(inp, w_ih_v[l],
                                 preferred_element_type=jnp.float32)
                         + jnp.dot(h[l], w_hh_v[l],
                                   preferred_element_type=jnp.float32))
                h[l], c[l] = lstm_cell(gates, c[l])
                inp = h[l]

            # Gather the top-layer output at t == length-1; the precomputed
            # one-hot mask makes this a single fma per step.
            dec = dec + mask_all[t] * inp

        # hidden2label (Linear with bias) + log_softmax epilogue.
        logits = jnp.dot(dec, w_out[...],
                         preferred_element_type=jnp.float32) + b_out[...]
        m = jnp.max(logits, axis=-1, keepdims=True)
        shifted = logits - m
        lse = jnp.log(jnp.sum(jnp.exp(shifted), axis=-1, keepdims=True))
        out_ref[...] = shifted - lse

    return kernel


def lstm_text2word_forward(x, lengths, w_ih_list, w_hh_list, w_out, b_out):
    """Wrapper: packs weights, pads batch, flattens x, calls the Pallas kernel.

    x        : (seq_len, batch, embedding_dim) f32, zero-padded past lengths
    lengths  : (batch,) int32; MUST satisfy 1 <= length <= seq_len, otherwise
               the one-hot gather silently yields zeros for that row
    w_ih_list: per-layer (4H, in_dim)  LSTM input weights  (PyTorch layout)
    w_hh_list: per-layer (4H, H)       LSTM hidden weights (PyTorch layout)
    w_out    : (n_labels, H) Linear weight
    b_out    : (n_labels,)   Linear bias
    returns  : (batch, n_labels) log-softmax scores
    """
    seq_len, batch, emb = x.shape
    num_layers = len(w_ih_list)
    H = w_hh_list[0].shape[1]
    n_labels = w_out.shape[0]

    # Pad batch to a multiple of 8 (f32 sublanes) so vregs are filled and all
    # per-step slices are sublane-aligned.  Padded rows produce garbage logits
    # that are sliced off at the end — never reuse out_p[batch:].
    batch_p = int(np.ceil(batch / 8) * 8)
    pad_b = batch_p - batch
    x_p = jnp.pad(jnp.asarray(x, jnp.float32), ((0, 0), (0, pad_b), (0, 0)))
    len_p = jnp.pad(jnp.asarray(lengths, jnp.int32), (0, pad_b),
                    constant_values=1)

    # Wrapper-side layout plumbing: flatten (T, Bp, E) -> (T*Bp, E) time-major
    # so the kernel needs no reshapes at all.
    x_flat = x_p.reshape(seq_len * batch_p, emb)

    # Precomputed "this is the last valid timestep" one-hot mask (T, Bp, 1).
    t_plus1 = jnp.arange(1, seq_len + 1, dtype=jnp.int32)[:, None]
    mask = (t_plus1 == len_p[None, :]).astype(jnp.float32)[..., None]

    # Weight packing: transpose once (PyTorch stores (4H, in)); keep ih / hh
    # separate so layers >= 1 use the two-dot, no-concat form.
    w_ih_t = [jnp.asarray(w.T, jnp.float32) for w in w_ih_list]    # (in, 4H)
    w_hh_t = [jnp.asarray(w.T, jnp.float32) for w in w_hh_list]    # (H, 4H)
    w_out_t = jnp.asarray(w_out.T, jnp.float32)                    # (H, n_lab)
    b_out_2d = jnp.asarray(b_out, jnp.float32).reshape(1, n_labels)

    inputs = (mask, x_flat, *w_ih_t, *w_hh_t, w_out_t, b_out_2d)

    kernel = _make_kernel(seq_len, num_layers, H, batch_p, emb)
    vmem = pl.BlockSpec(memory_space=pltpu.MemorySpace.VMEM)

    out_p = pl.pallas_call(
        kernel,
        out_shape=jax.ShapeDtypeStruct((batch_p, n_labels), jnp.float32),
        in_specs=[vmem] * len(inputs),
        out_specs=vmem,
    )(*inputs)
    return out_p[:batch]


def _reference_forward(x, lengths, w_ih_list, w_hh_list, w_out, b_out):
    """Pure-JAX reference matching the PyTorch module semantics."""
    seq_len, batch, _ = x.shape
    num_layers = len(w_ih_list)
    H = w_hh_list[0].shape[1]
    h = jnp.zeros((num_layers, batch, H), jnp.float32)
    c = jnp.zeros((num_layers, batch, H), jnp.float32)
    dec = jnp.zeros((batch, H), jnp.float32)
    for t in range(seq_len):
        inp = x[t]
        for l in range(num_layers):
            gates = inp @ w_ih_list[l].T + h[l] @ w_hh_list[l].T  # bias=False
            i_g = jax.nn.sigmoid(gates[:, 0 * H:1 * H])
            f_g = jax.nn.sigmoid(gates[:, 1 * H:2 * H])
            g_g = jnp.tanh(gates[:, 2 * H:3 * H])
            o_g = jax.nn.sigmoid(gates[:, 3 * H:4 * H])
            c_new = f_g * c[l] + i_g * g_g
            h_new = o_g * jnp.tanh(c_new)
            c = c.at[l].set(c_new)
            h = h.at[l].set(h_new)
            inp = h_new
        m = (lengths == (t + 1))[:, None]
        dec = jnp.where(m, inp, dec)
    logits = dec @ w_out.T + b_out
    return jax.nn.log_softmax(logits, axis=-1)


if __name__ == "__main__":
    # Module hyperparameters (small, consistent with the forward pass).
    embedding_dim = 16
    hidden_dim = 32
    labelset_size = 10
    lstm_layers = 2
    batch_size = 4
    seq_len = 8

    key = jax.random.PRNGKey(0)
    keys = jax.random.split(key, 2 * lstm_layers + 4)

    # Deterministic parameter init (uniform(-1/sqrt(H), 1/sqrt(H)), like nn.LSTM).
    bound = 1.0 / np.sqrt(hidden_dim)
    w_ih_list, w_hh_list = [], []
    for l in range(lstm_layers):
        in_dim = embedding_dim if l == 0 else hidden_dim
        w_ih_list.append(jax.random.uniform(
            keys[2 * l], (4 * hidden_dim, in_dim), jnp.float32, -bound, bound))
        w_hh_list.append(jax.random.uniform(
            keys[2 * l + 1], (4 * hidden_dim, hidden_dim), jnp.float32,
            -bound, bound))
    w_out = jax.random.uniform(
        keys[2 * lstm_layers], (labelset_size, hidden_dim), jnp.float32,
        -bound, bound)
    b_out = jax.random.uniform(
        keys[2 * lstm_layers + 1], (labelset_size,), jnp.float32, -bound, bound)

    # Input "packed sequence" as padded dense tensor + lengths.
    x = jax.random.normal(keys[2 * lstm_layers + 2],
                          (seq_len, batch_size, embedding_dim), jnp.float32)
    lengths = jnp.array([8, 5, 3, 8], dtype=jnp.int32)
    # Zero-pad past each sequence's length (pad_packed_sequence convention).
    t_idx = jnp.arange(seq_len)[:, None, None]
    x = jnp.where(t_idx < lengths[None, :, None], x, 0.0)

    out = lstm_text2word_forward(x, lengths, w_ih_list, w_hh_list, w_out, b_out)
    out = jax.block_until_ready(out)

    ref = _reference_forward(x, lengths, w_ih_list, w_hh_list, w_out, b_out)
    np.testing.assert_allclose(np.asarray(out), np.asarray(ref),
                               rtol=1e-3, atol=1e-3)

    print("KERNEL_OK")
</pallas_src>

<mosaic_0001>
module attributes {stable_mosaic.version = 11 : i64} {
  func.func @kernel(%arg0: memref<8x8x1xf32, #tpu.memory_space<vmem>>, %arg1: memref<64x16xf32, #tpu.memory_space<vmem>>, %arg2: memref<16x128xf32, #tpu.memory_space<vmem>>, %arg3: memref<32x128xf32, #tpu.memory_space<vmem>>, %arg4: memref<32x128xf32, #tpu.memory_space<vmem>>, %arg5: memref<32x128xf32, #tpu.memory_space<vmem>>, %arg6: memref<32x10xf32, #tpu.memory_space<vmem>>, %arg7: memref<1x10xf32, #tpu.memory_space<vmem>>, %arg8: memref<8x10xf32, #tpu.memory_space<vmem>>) attributes {dimension_semantics = [], scalar_prefetch = 0 : i64, scratch_operands = 0 : i64, tpu.core_type = #tpu.core_type<tc>} {
    %c0 = arith.constant 0 : index
    %c0_0 = arith.constant 0 : index
    %0 = vector.load %arg1[%c0, %c0_0] : memref<64x16xf32, #tpu.memory_space<vmem>>, vector<64x16xf32>
    %c0_1 = arith.constant 0 : index
    %c0_2 = arith.constant 0 : index
    %1 = vector.load %arg2[%c0_1, %c0_2] : memref<16x128xf32, #tpu.memory_space<vmem>>, vector<16x128xf32>
    %cst = arith.constant dense<0.000000e+00> : vector<64x128xf32>
    %2 = tpu.matmul %0, %1, %cst {dimension_numbers = #tpu.dot_dimension_numbers<[1], [0], [0], [1], [0, 0, 1, 1], [], []>} : vector<64x16xf32>, vector<16x128xf32>, vector<64x128xf32> -> vector<64x128xf32>
    %c0_3 = arith.constant 0 : index
    %c0_4 = arith.constant 0 : index
    %3 = vector.load %arg4[%c0_3, %c0_4] : memref<32x128xf32, #tpu.memory_space<vmem>>, vector<32x128xf32>
    %c0_5 = arith.constant 0 : index
    %c0_6 = arith.constant 0 : index
    %4 = vector.load %arg5[%c0_5, %c0_6] : memref<32x128xf32, #tpu.memory_space<vmem>>, vector<32x128xf32>
    %c0_7 = arith.constant 0 : index
    %c0_8 = arith.constant 0 : index
    %5 = vector.load %arg3[%c0_7, %c0_8] : memref<32x128xf32, #tpu.memory_space<vmem>>, vector<32x128xf32>
    %c0_9 = arith.constant 0 : index
    %c0_10 = arith.constant 0 : index
    %c0_11 = arith.constant 0 : index
    %6 = vector.load %arg0[%c0_9, %c0_10, %c0_11] : memref<8x8x1xf32, #tpu.memory_space<vmem>>, vector<8x8x1xf32>
    %cst_12 = arith.constant 0.000000e+00 : f32
    %7 = vector.broadcast %cst_12 : f32 to vector<8x32xf32>
    %cst_13 = arith.constant 0.000000e+00 : f32
    %8 = vector.broadcast %cst_13 : f32 to vector<8x32xf32>
    %cst_14 = arith.constant 0.000000e+00 : f32
    %9 = vector.broadcast %cst_14 : f32 to vector<8x32xf32>
    %cst_15 = arith.constant 0.000000e+00 : f32
    %10 = vector.broadcast %cst_15 : f32 to vector<8x32xf32>
    %cst_16 = arith.constant 0.000000e+00 : f32
    %11 = vector.broadcast %cst_16 : f32 to vector<8x32xf32>
    %12 = vector.extract_strided_slice %2 {offsets = [0, 0], sizes = [8, 128], strides = [1, 1]} : vector<64x128xf32> to vector<8x128xf32>
    %cst_17 = arith.constant dense<0.000000e+00> : vector<8x128xf32>
    %13 = tpu.matmul %7, %3, %cst_17 {dimension_numbers = #tpu.dot_dimension_numbers<[1], [0], [0], [1], [0, 0, 1, 1], [], []>} : vector<8x32xf32>, vector<32x128xf32>, vector<8x128xf32> -> vector<8x128xf32>
    %14 = arith.addf %12, %13 : vector<8x128xf32>
    %15 = arith.negf %14 : vector<8x128xf32>
    %16 = math.exp %15 : vector<8x128xf32>
    %cst_18 = arith.constant 1.000000e+00 : f32
    %17 = vector.broadcast %cst_18 : f32 to vector<8x128xf32>
    %18 = arith.addf %17, %16 : vector<8x128xf32>
    %19 = arith.divf %17, %18 : vector<8x128xf32>
    %20 = math.tanh %14 : vector<8x128xf32>
    %21 = vector.extract_strided_slice %19 {offsets = [0, 0], sizes = [8, 32], strides = [1, 1]} : vector<8x128xf32> to vector<8x32xf32>
    %22 = vector.extract_strided_slice %19 {offsets = [0, 32], sizes = [8, 32], strides = [1, 1]} : vector<8x128xf32> to vector<8x32xf32>
    %23 = vector.extract_strided_slice %20 {offsets = [0, 64], sizes = [8, 32], strides = [1, 1]} : vector<8x128xf32> to vector<8x32xf32>
    %24 = vector.extract_strided_slice %19 {offsets = [0, 96], sizes = [8, 32], strides = [1, 1]} : vector<8x128xf32> to vector<8x32xf32>
    %25 = arith.mulf %22, %9 : vector<8x32xf32>
    %26 = arith.mulf %21, %23 : vector<8x32xf32>
    %27 = arith.addf %25, %26 : vector<8x32xf32>
    %28 = math.tanh %27 : vector<8x32xf32>
    %29 = arith.mulf %24, %28 : vector<8x32xf32>
    %cst_19 = arith.constant dense<0.000000e+00> : vector<8x128xf32>
    %30 = tpu.matmul %29, %5, %cst_19 {dimension_numbers = #tpu.dot_dimension_numbers<[1], [0], [0], [1], [0, 0, 1, 1], [], []>} : vector<8x32xf32>, vector<32x128xf32>, vector<8x128xf32> -> vector<8x128xf32>
    %cst_20 = arith.constant dense<0.000000e+00> : vector<8x128xf32>
    %31 = tpu.matmul %8, %4, %cst_20 {dimension_numbers = #tpu.dot_dimension_numbers<[1], [0], [0], [1], [0, 0, 1, 1], [], []>} : vector<8x32xf32>, vector<32x128xf32>, vector<8x128xf32> -> vector<8x128xf32>
    %32 = arith.addf %30, %31 : vector<8x128xf32>
    %33 = arith.negf %32 : vector<8x128xf32>
    %34 = math.exp %33 : vector<8x128xf32>
    %cst_21 = arith.constant 1.000000e+00 : f32
    %35 = vector.broadcast %cst_21 : f32 to vector<8x128xf32>
    %36 = arith.addf %35, %34 : vector<8x128xf32>
    %37 = arith.divf %35, %36 : vector<8x128xf32>
    %38 = math.tanh %32 : vector<8x128xf32>
    %39 = vector.extract_strided_slice %37 {offsets = [0, 0], sizes = [8, 32], strides = [1, 1]} : vector<8x128xf32> to vector<8x32xf32>
    %40 = vector.extract_strided_slice %37 {offsets = [0, 32], sizes = [8, 32], strides = [1, 1]} : vector<8x128xf32> to vector<8x32xf32>
    %41 = vector.extract_strided_slice %38 {offsets = [0, 64], sizes = [8, 32], strides = [1, 1]} : vector<8x128xf32> to vector<8x32xf32>
    %42 = vector.extract_strided_slice %37 {offsets = [0, 96], sizes = [8, 32], strides = [1, 1]} : vector<8x128xf32> to vector<8x32xf32>
    %43 = arith.mulf %40, %10 : vector<8x32xf32>
    %44 = arith.mulf %39, %41 : vector<8x32xf32>
    %45 = arith.addf %43, %44 : vector<8x32xf32>
    %46 = math.tanh %45 : vector<8x32xf32>
    %47 = arith.mulf %42, %46 : vector<8x32xf32>
    %48 = vector.extract_strided_slice %6 {offsets = [0, 0, 0], sizes = [1, 8, 1], strides = [1, 1, 1]} : vector<8x8x1xf32> to vector<1x8x1xf32>
    %49 = vector.shape_cast %48 : vector<1x8x1xf32> to vector<8x1xf32>
    %50 = vector.broadcast %49 : vector<8x1xf32> to vector<8x32xf32>
    %51 = arith.mulf %50, %47 : vector<8x32xf32>
    %52 = arith.addf %11, %51 : vector<8x32xf32>
    %53 = vector.extract_strided_slice %2 {offsets = [8, 0], sizes = [8, 128], strides = [1, 1]} : vector<64x128xf32> to vector<8x128xf32>
    %cst_22 = arith.constant dense<0.000000e+00> : vector<8x128xf32>
    %54 = tpu.matmul %29, %3, %cst_22 {dimension_numbers = #tpu.dot_dimension_numbers<[1], [0], [0], [1], [0, 0, 1, 1], [], []>} : vector<8x32xf32>, vector<32x128xf32>, vector<8x128xf32> -> vector<8x128xf32>
    %55 = arith.addf %53, %54 : vector<8x128xf32>
    %56 = arith.negf %55 : vector<8x128xf32>
    %57 = math.exp %56 : vector<8x128xf32>
    %cst_23 = arith.constant 1.000000e+00 : f32
    %58 = vector.broadcast %cst_23 : f32 to vector<8x128xf32>
    %59 = arith.addf %58, %57 : vector<8x128xf32>
    %60 = arith.divf %58, %59 : vector<8x128xf32>
    %61 = math.tanh %55 : vector<8x128xf32>
    %62 = vector.extract_strided_slice %60 {offsets = [0, 0], sizes = [8, 32], strides = [1, 1]} : vector<8x128xf32> to vector<8x32xf32>
    %63 = vector.extract_strided_slice %60 {offsets = [0, 32], sizes = [8, 32], strides = [1, 1]} : vector<8x128xf32> to vector<8x32xf32>
    %64 = vector.extract_strided_slice %61 {offsets = [0, 64], sizes = [8, 32], strides = [1, 1]} : vector<8x128xf32> to vector<8x32xf32>
    %65 = vector.extract_strided_slice %60 {offsets = [0, 96], sizes = [8, 32], strides = [1, 1]} : vector<8x128xf32> to vector<8x32xf32>
    %66 = arith.mulf %63, %27 : vector<8x32xf32>
    %67 = arith.mulf %62, %64 : vector<8x32xf32>
    %68 = arith.addf %66, %67 : vector<8x32xf32>
    %69 = math.tanh %68 : vector<8x32xf32>
    %70 = arith.mulf %65, %69 : vector<8x32xf32>
    %cst_24 = arith.constant dense<0.000000e+00> : vector<8x128xf32>
    %71 = tpu.matmul %70, %5, %cst_24 {dimension_numbers = #tpu.dot_dimension_numbers<[1], [0], [0], [1], [0, 0, 1, 1], [], []>} : vector<8x32xf32>, vector<32x128xf32>, vector<8x128xf32> -> vector<8x128xf32>
    %cst_25 = arith.constant dense<0.000000e+00> : vector<8x128xf32>
    %72 = tpu.matmul %47, %4, %cst_25 {dimension_numbers = #tpu.dot_dimension_numbers<[1], [0], [0], [1], [0, 0, 1, 1], [], []>} : vector<8x32xf32>, vector<32x128xf32>, vector<8x128xf32> -> vector<8x128xf32>
    %73 = arith.addf %71, %72 : vector<8x128xf32>
    %74 = arith.negf %73 : vector<8x128xf32>
    %75 = math.exp %74 : vector<8x128xf32>
    %cst_26 = arith.constant 1.000000e+00 : f32
    %76 = vector.broadcast %cst_26 : f32 to vector<8x128xf32>
    %77 = arith.addf %76, %75 : vector<8x128xf32>
    %78 = arith.divf %76, %77 : vector<8x128xf32>
    %79 = math.tanh %73 : vector<8x128xf32>
    %80 = vector.extract_strided_slice %78 {offsets = [0, 0], sizes = [8, 32], strides = [1, 1]} : vector<8x128xf32> to vector<8x32xf32>
    %81 = vector.extract_strided_slice %78 {offsets = [0, 32], sizes = [8, 32], strides = [1, 1]} : vector<8x128xf32> to vector<8x32xf32>
    %82 = vector.extract_strided_slice %79 {offsets = [0, 64], sizes = [8, 32], strides = [1, 1]} : vector<8x128xf32> to vector<8x32xf32>
    %83 = vector.extract_strided_slice %78 {offsets = [0, 96], sizes = [8, 32], strides = [1, 1]} : vector<8x128xf32> to vector<8x32xf32>
    %84 = arith.mulf %81, %45 : vector<8x32xf32>
    %85 = arith.mulf %80, %82 : vector<8x32xf32>
    %86 = arith.addf %84, %85 : vector<8x32xf32>
    %87 = math.tanh %86 : vector<8x32xf32>
    %88 = arith.mulf %83, %87 : vector<8x32xf32>
    %89 = vector.extract_strided_slice %6 {offsets = [1, 0, 0], sizes = [1, 8, 1], strides = [1, 1, 1]} : vector<8x8x1xf32> to vector<1x8x1xf32>
    %90 = vector.shape_cast %89 : vector<1x8x1xf32> to vector<8x1xf32>
    %91 = vector.broadcast %90 : vector<8x1xf32> to vector<8x32xf32>
    %92 = arith.mulf %91, %88 : vector<8x32xf32>
    %93 = arith.addf %52, %92 : vector<8x32xf32>
    %94 = vector.extract_strided_slice %2 {offsets = [16, 0], sizes = [8, 128], strides = [1, 1]} : vector<64x128xf32> to vector<8x128xf32>
    %cst_27 = arith.constant dense<0.000000e+00> : vector<8x128xf32>
    %95 = tpu.matmul %70, %3, %cst_27 {dimension_numbers = #tpu.dot_dimension_numbers<[1], [0], [0], [1], [0, 0, 1, 1], [], []>} : vector<8x32xf32>, vector<32x128xf32>, vector<8x128xf32> -> vector<8x128xf32>
    %96 = arith.addf %94, %95 : vector<8x128xf32>
    %97 = arith.negf %96 : vector<8x128xf32>
    %98 = math.exp %97 : vector<8x128xf32>
    %cst_28 = arith.constant 1.000000e+00 : f32
    %99 = vector.broadcast %cst_28 : f32 to vector<8x128xf32>
    %100 = arith.addf %99, %98 : vector<8x128xf32>
    %101 = arith.divf %99, %100 : vector<8x128xf32>
    %102 = math.tanh %96 : vector<8x128xf32>
    %103 = vector.extract_strided_slice %101 {offsets = [0, 0], sizes = [8, 32], strides = [1, 1]} : vector<8x128xf32> to vector<8x32xf32>
    %104 = vector.extract_strided_slice %101 {offsets = [0, 32], sizes = [8, 32], strides = [1, 1]} : vector<8x128xf32> to vector<8x32xf32>
    %105 = vector.extract_strided_slice %102 {offsets = [0, 64], sizes = [8, 32], strides = [1, 1]} : vector<8x128xf32> to vector<8x32xf32>
    %106 = vector.extract_strided_slice %101 {offsets = [0, 96], sizes = [8, 32], strides = [1, 1]} : vector<8x128xf32> to vector<8x32xf32>
    %107 = arith.mulf %104, %68 : vector<8x32xf32>
    %108 = arith.mulf %103, %105 : vector<8x32xf32>
    %109 = arith.addf %107, %108 : vector<8x32xf32>
    %110 = math.tanh %109 : vector<8x32xf32>
    %111 = arith.mulf %106, %110 : vector<8x32xf32>
    %cst_29 = arith.constant dense<0.000000e+00> : vector<8x128xf32>
    %112 = tpu.matmul %111, %5, %cst_29 {dimension_numbers = #tpu.dot_dimension_numbers<[1], [0], [0], [1], [0, 0, 1, 1], [], []>} : vector<8x32xf32>, vector<32x128xf32>, vector<8x128xf32> -> vector<8x128xf32>
    %cst_30 = arith.constant dense<0.000000e+00> : vector<8x128xf32>
    %113 = tpu.matmul %88, %4, %cst_30 {dimension_numbers = #tpu.dot_dimension_numbers<[1], [0], [0], [1], [0, 0, 1, 1], [], []>} : vector<8x32xf32>, vector<32x128xf32>, vector<8x128xf32> -> vector<8x128xf32>
    %114 = arith.addf %112, %113 : vector<8x128xf32>
    %115 = arith.negf %114 : vector<8x128xf32>
    %116 = math.exp %115 : vector<8x128xf32>
    %cst_31 = arith.constant 1.000000e+00 : f32
    %117 = vector.broadcast %cst_31 : f32 to vector<8x128xf32>
    %118 = arith.addf %117, %116 : vector<8x128xf32>
    %119 = arith.divf %117, %118 : vector<8x128xf32>
    %120 = math.tanh %114 : vector<8x128xf32>
    %121 = vector.extract_strided_slice %119 {offsets = [0, 0], sizes = [8, 32], strides = [1, 1]} : vector<8x128xf32> to vector<8x32xf32>
    %122 = vector.extract_strided_slice %119 {offsets = [0, 32], sizes = [8, 32], strides = [1, 1]} : vector<8x128xf32> to vector<8x32xf32>
    %123 = vector.extract_strided_slice %120 {offsets = [0, 64], sizes = [8, 32], strides = [1, 1]} : vector<8x128xf32> to vector<8x32xf32>
    %124 = vector.extract_strided_slice %119 {offsets = [0, 96], sizes = [8, 32], strides = [1, 1]} : vector<8x128xf32> to vector<8x32xf32>
    %125 = arith.mulf %122, %86 : vector<8x32xf32>
    %126 = arith.mulf %121, %123 : vector<8x32xf32>
    %127 = arith.addf %125, %126 : vector<8x32xf32>
    %128 = math.tanh %127 : vector<8x32xf32>
    %129 = arith.mulf %124, %128 : vector<8x32xf32>
    %130 = vector.extract_strided_slice %6 {offsets = [2, 0, 0], sizes = [1, 8, 1], strides = [1, 1, 1]} : vector<8x8x1xf32> to vector<1x8x1xf32>
    %131 = vector.shape_cast %130 : vector<1x8x1xf32> to vector<8x1xf32>
    %132 = vector.broadcast %131 : vector<8x1xf32> to vector<8x32xf32>
    %133 = arith.mulf %132, %129 : vector<8x32xf32>
    %134 = arith.addf %93, %133 : vector<8x32xf32>
    %135 = vector.extract_strided_slice %2 {offsets = [24, 0], sizes = [8, 128], strides = [1, 1]} : vector<64x128xf32> to vector<8x128xf32>
    %cst_32 = arith.constant dense<0.000000e+00> : vector<8x128xf32>
    %136 = tpu.matmul %111, %3, %cst_32 {dimension_numbers = #tpu.dot_dimension_numbers<[1], [0], [0], [1], [0, 0, 1, 1], [], []>} : vector<8x32xf32>, vector<32x128xf32>, vector<8x128xf32> -> vector<8x128xf32>
    %137 = arith.addf %135, %136 : vector<8x128xf32>
    %138 = arith.negf %137 : vector<8x128xf32>
    %139 = math.exp %138 : vector<8x128xf32>
    %cst_33 = arith.constant 1.000000e+00 : f32
    %140 = vector.broadcast %cst_33 : f32 to vector<8x128xf32>
    %141 = arith.addf %140, %139 : vector<8x128xf32>
    %142 = arith.divf %140, %141 : vector<8x128xf32>
    %143 = math.tanh %137 : vector<8x128xf32>
    %144 = vector.extract_strided_slice %142 {offsets = [0, 0], sizes = [8, 32], strides = [1, 1]} : vector<8x128xf32> to vector<8x32xf32>
    %145 = vector.extract_strided_slice %142 {offsets = [0, 32], sizes = [8, 32], strides = [1, 1]} : vector<8x128xf32> to vector<8x32xf32>
    %146 = vector.extract_strided_slice %143 {offsets = [0, 64], sizes = [8, 32], strides = [1, 1]} : vector<8x128xf32> to vector<8x32xf32>
    %147 = vector.extract_strided_slice %142 {offsets = [0, 96], sizes = [8, 32], strides = [1, 1]} : vector<8x128xf32> to vector<8x32xf32>
    %148 = arith.mulf %145, %109 : vector<8x32xf32>
    %149 = arith.mulf %144, %146 : vector<8x32xf32>
    %150 = arith.addf %148, %149 : vector<8x32xf32>
    %151 = math.tanh %150 : vector<8x32xf32>
    %152 = arith.mulf %147, %151 : vector<8x32xf32>
    %cst_34 = arith.constant dense<0.000000e+00> : vector<8x128xf32>
    %153 = tpu.matmul %152, %5, %cst_34 {dimension_numbers = #tpu.dot_dimension_numbers<[1], [0], [0], [1], [0, 0, 1, 1], [], []>} : vector<8x32xf32>, vector<32x128xf32>, vector<8x128xf32> -> vector<8x128xf32>
    %cst_35 = arith.constant dense<0.000000e+00> : vector<8x128xf32>
    %154 = tpu.matmul %129, %4, %cst_35 {dimension_numbers = #tpu.dot_dimension_numbers<[1], [0], [0], [1], [0, 0, 1, 1], [], []>} : vector<8x32xf32>, vector<32x128xf32>, vector<8x128xf32> -> vector<8x128xf32>
    %155 = arith.addf %153, %154 : vector<8x128xf32>
    %156 = arith.negf %155 : vector<8x128xf32>
    %157 = math.exp %156 : vector<8x128xf32>
    %cst_36 = arith.constant 1.000000e+00 : f32
    %158 = vector.broadcast %cst_36 : f32 to vector<8x128xf32>
    %159 = arith.addf %158, %157 : vector<8x128xf32>
    %160 = arith.divf %158, %159 : vector<8x128xf32>
    %161 = math.tanh %155 : vector<8x128xf32>
    %162 = vector.extract_strided_slice %160 {offsets = [0, 0], sizes = [8, 32], strides = [1, 1]} : vector<8x128xf32> to vector<8x32xf32>
    %163 = vector.extract_strided_slice %160 {offsets = [0, 32], sizes = [8, 32], strides = [1, 1]} : vector<8x128xf32> to vector<8x32xf32>
    %164 = vector.extract_strided_slice %161 {offsets = [0, 64], sizes = [8, 32], strides = [1, 1]} : vector<8x128xf32> to vector<8x32xf32>
    %165 = vector.extract_strided_slice %160 {offsets = [0, 96], sizes = [8, 32], strides = [1, 1]} : vector<8x128xf32> to vector<8x32xf32>
    %166 = arith.mulf %163, %127 : vector<8x32xf32>
    %167 = arith.mulf %162, %164 : vector<8x32xf32>
    %168 = arith.addf %166, %167 : vector<8x32xf32>
    %169 = math.tanh %168 : vector<8x32xf32>
    %170 = arith.mulf %165, %169 : vector<8x32xf32>
    %171 = vector.extract_strided_slice %6 {offsets = [3, 0, 0], sizes = [1, 8, 1], strides = [1, 1, 1]} : vector<8x8x1xf32> to vector<1x8x1xf32>
    %172 = vector.shape_cast %171 : vector<1x8x1xf32> to vector<8x1xf32>
    %173 = vector.broadcast %172 : vector<8x1xf32> to vector<8x32xf32>
    %174 = arith.mulf %173, %170 : vector<8x32xf32>
    %175 = arith.addf %134, %174 : vector<8x32xf32>
    %176 = vector.extract_strided_slice %2 {offsets = [32, 0], sizes = [8, 128], strides = [1, 1]} : vector<64x128xf32> to vector<8x128xf32>
    %cst_37 = arith.constant dense<0.000000e+00> : vector<8x128xf32>
    %177 = tpu.matmul %152, %3, %cst_37 {dimension_numbers = #tpu.dot_dimension_numbers<[1], [0], [0], [1], [0, 0, 1, 1], [], []>} : vector<8x32xf32>, vector<32x128xf32>, vector<8x128xf32> -> vector<8x128xf32>
    %178 = arith.addf %176, %177 : vector<8x128xf32>
    %179 = arith.negf %178 : vector<8x128xf32>
    %180 = math.exp %179 : vector<8x128xf32>
    %cst_38 = arith.constant 1.000000e+00 : f32
    %181 = vector.broadcast %cst_38 : f32 to vector<8x128xf32>
    %182 = arith.addf %181, %180 : vector<8x128xf32>
    %183 = arith.divf %181, %182 : vector<8x128xf32>
    %184 = math.tanh %178 : vector<8x128xf32>
    %185 = vector.extract_strided_slice %183 {offsets = [0, 0], sizes = [8, 32], strides = [1, 1]} : vector<8x128xf32> to vector<8x32xf32>
    %186 = vector.extract_strided_slice %183 {offsets = [0, 32], sizes = [8, 32], strides = [1, 1]} : vector<8x128xf32> to vector<8x32xf32>
    %187 = vector.extract_strided_slice %184 {offsets = [0, 64], sizes = [8, 32], strides = [1, 1]} : vector<8x128xf32> to vector<8x32xf32>
    %188 = vector.extract_strided_slice %183 {offsets = [0, 96], sizes = [8, 32], strides = [1, 1]} : vector<8x128xf32> to vector<8x32xf32>
    %189 = arith.mulf %186, %150 : vector<8x32xf32>
    %190 = arith.mulf %185, %187 : vector<8x32xf32>
    %191 = arith.addf %189, %190 : vector<8x32xf32>
    %192 = math.tanh %191 : vector<8x32xf32>
    %193 = arith.mulf %188, %192 : vector<8x32xf32>
    %cst_39 = arith.constant dense<0.000000e+00> : vector<8x128xf32>
    %194 = tpu.matmul %193, %5, %cst_39 {dimension_numbers = #tpu.dot_dimension_numbers<[1], [0], [0], [1], [0, 0, 1, 1], [], []>} : vector<8x32xf32>, vector<32x128xf32>, vector<8x128xf32> -> vector<8x128xf32>
    %cst_40 = arith.constant dense<0.000000e+00> : vector<8x128xf32>
    %195 = tpu.matmul %170, %4, %cst_40 {dimension_numbers = #tpu.dot_dimension_numbers<[1], [0], [0], [1], [0, 0, 1, 1], [], []>} : vector<8x32xf32>, vector<32x128xf32>, vector<8x128xf32> -> vector<8x128xf32>
    %196 = arith.addf %194, %195 : vector<8x128xf32>
    %197 = arith.negf %196 : vector<8x128xf32>
    %198 = math.exp %197 : vector<8x128xf32>
    %cst_41 = arith.constant 1.000000e+00 : f32
    %199 = vector.broadcast %cst_41 : f32 to vector<8x128xf32>
    %200 = arith.addf %199, %198 : vector<8x128xf32>
    %201 = arith.divf %199, %200 : vector<8x128xf32>
    %202 = math.tanh %196 : vector<8x128xf32>
    %203 = vector.extract_strided_slice %201 {offsets = [0, 0], sizes = [8, 32], strides = [1, 1]} : vector<8x128xf32> to vector<8x32xf32>
    %204 = vector.extract_strided_slice %201 {offsets = [0, 32], sizes = [8, 32], strides = [1, 1]} : vector<8x128xf32> to vector<8x32xf32>
    %205 = vector.extract_strided_slice %202 {offsets = [0, 64], sizes = [8, 32], strides = [1, 1]} : vector<8x128xf32> to vector<8x32xf32>
    %206 = vector.extract_strided_slice %201 {offsets = [0, 96], sizes = [8, 32], strides = [1, 1]} : vector<8x128xf32> to vector<8x32xf32>
    %207 = arith.mulf %204, %168 : vector<8x32xf32>
    %208 = arith.mulf %203, %205 : vector<8x32xf32>
    %209 = arith.addf %207, %208 : vector<8x32xf32>
    %210 = math.tanh %209 : vector<8x32xf32>
    %211 = arith.mulf %206, %210 : vector<8x32xf32>
    %212 = vector.extract_strided_slice %6 {offsets = [4, 0, 0], sizes = [1, 8, 1], strides = [1, 1, 1]} : vector<8x8x1xf32> to vector<1x8x1xf32>
    %213 = vector.shape_cast %212 : vector<1x8x1xf32> to vector<8x1xf32>
    %214 = vector.broadcast %213 : vector<8x1xf32> to vector<8x32xf32>
    %215 = arith.mulf %214, %211 : vector<8x32xf32>
    %216 = arith.addf %175, %215 : vector<8x32xf32>
    %217 = vector.extract_strided_slice %2 {offsets = [40, 0], sizes = [8, 128], strides = [1, 1]} : vector<64x128xf32> to vector<8x128xf32>
    %cst_42 = arith.constant dense<0.000000e+00> : vector<8x128xf32>
    %218 = tpu.matmul %193, %3, %cst_42 {dimension_numbers = #tpu.dot_dimension_numbers<[1], [0], [0], [1], [0, 0, 1, 1], [], []>} : vector<8x32xf32>, vector<32x128xf32>, vector<8x128xf32> -> vector<8x128xf32>
    %219 = arith.addf %217, %218 : vector<8x128xf32>
    %220 = arith.negf %219 : vector<8x128xf32>
    %221 = math.exp %220 : vector<8x128xf32>
    %cst_43 = arith.constant 1.000000e+00 : f32
    %222 = vector.broadcast %cst_43 : f32 to vector<8x128xf32>
    %223 = arith.addf %222, %221 : vector<8x128xf32>
    %224 = arith.divf %222, %223 : vector<8x128xf32>
    %225 = math.tanh %219 : vector<8x128xf32>
    %226 = vector.extract_strided_slice %224 {offsets = [0, 0], sizes = [8, 32], strides = [1, 1]} : vector<8x128xf32> to vector<8x32xf32>
    %227 = vector.extract_strided_slice %224 {offsets = [0, 32], sizes = [8, 32], strides = [1, 1]} : vector<8x128xf32> to vector<8x32xf32>
    %228 = vector.extract_strided_slice %225 {offsets = [0, 64], sizes = [8, 32], strides = [1, 1]} : vector<8x128xf32> to vector<8x32xf32>
    %229 = vector.extract_strided_slice %224 {offsets = [0, 96], sizes = [8, 32], strides = [1, 1]} : vector<8x128xf32> to vector<8x32xf32>
    %230 = arith.mulf %227, %191 : vector<8x32xf32>
    %231 = arith.mulf %226, %228 : vector<8x32xf32>
    %232 = arith.addf %230, %231 : vector<8x32xf32>
    %233 = math.tanh %232 : vector<8x32xf32>
    %234 = arith.mulf %229, %233 : vector<8x32xf32>
    %cst_44 = arith.constant dense<0.000000e+00> : vector<8x128xf32>
    %235 = tpu.matmul %234, %5, %cst_44 {dimension_numbers = #tpu.dot_dimension_numbers<[1], [0], [0], [1], [0, 0, 1, 1], [], []>} : vector<8x32xf32>, vector<32x128xf32>, vector<8x128xf32> -> vector<8x128xf32>
    %cst_45 = arith.constant dense<0.000000e+00> : vector<8x128xf32>
    %236 = tpu.matmul %211, %4, %cst_45 {dimension_numbers = #tpu.dot_dimension_numbers<[1], [0], [0], [1], [0, 0, 1, 1], [], []>} : vector<8x32xf32>, vector<32x128xf32>, vector<8x128xf32> -> vector<8x128xf32>
    %237 = arith.addf %235, %236 : vector<8x128xf32>
    %238 = arith.negf %237 : vector<8x128xf32>
    %239 = math.exp %238 : vector<8x128xf32>
    %cst_46 = arith.constant 1.000000e+00 : f32
    %240 = vector.broadcast %cst_46 : f32 to vector<8x128xf32>
    %241 = arith.addf %240, %239 : vector<8x128xf32>
    %242 = arith.divf %240, %241 : vector<8x128xf32>
    %243 = math.tanh %237 : vector<8x128xf32>
    %244 = vector.extract_strided_slice %242 {offsets = [0, 0], sizes = [8, 32], strides = [1, 1]} : vector<8x128xf32> to vector<8x32xf32>
    %245 = vector.extract_strided_slice %242 {offsets = [0, 32], sizes = [8, 32], strides = [1, 1]} : vector<8x128xf32> to vector<8x32xf32>
    %246 = vector.extract_strided_slice %243 {offsets = [0, 64], sizes = [8, 32], strides = [1, 1]} : vector<8x128xf32> to vector<8x32xf32>
    %247 = vector.extract_strided_slice %242 {offsets = [0, 96], sizes = [8, 32], strides = [1, 1]} : vector<8x128xf32> to vector<8x32xf32>
    %248 = arith.mulf %245, %209 : vector<8x32xf32>
    %249 = arith.mulf %244, %246 : vector<8x32xf32>
    %250 = arith.addf %248, %249 : vector<8x32xf32>
    %251 = math.tanh %250 : vector<8x32xf32>
    %252 = arith.mulf %247, %251 : vector<8x32xf32>
    %253 = vector.extract_strided_slice %6 {offsets = [5, 0, 0], sizes = [1, 8, 1], strides = [1, 1, 1]} : vector<8x8x1xf32> to vector<1x8x1xf32>
    %254 = vector.shape_cast %253 : vector<1x8x1xf32> to vector<8x1xf32>
    %255 = vector.broadcast %254 : vector<8x1xf32> to vector<8x32xf32>
    %256 = arith.mulf %255, %252 : vector<8x32xf32>
    %257 = arith.addf %216, %256 : vector<8x32xf32>
    %258 = vector.extract_strided_slice %2 {offsets = [48, 0], sizes = [8, 128], strides = [1, 1]} : vector<64x128xf32> to vector<8x128xf32>
    %cst_47 = arith.constant dense<0.000000e+00> : vector<8x128xf32>
    %259 = tpu.matmul %234, %3, %cst_47 {dimension_numbers = #tpu.dot_dimension_numbers<[1], [0], [0], [1], [0, 0, 1, 1], [], []>} : vector<8x32xf32>, vector<32x128xf32>, vector<8x128xf32> -> vector<8x128xf32>
    %260 = arith.addf %258, %259 : vector<8x128xf32>
    %261 = arith.negf %260 : vector<8x128xf32>
    %262 = math.exp %261 : vector<8x128xf32>
    %cst_48 = arith.constant 1.000000e+00 : f32
    %263 = vector.broadcast %cst_48 : f32 to vector<8x128xf32>
    %264 = arith.addf %263, %262 : vector<8x128xf32>
    %265 = arith.divf %263, %264 : vector<8x128xf32>
    %266 = math.tanh %260 : vector<8x128xf32>
    %267 = vector.extract_strided_slice %265 {offsets = [0, 0], sizes = [8, 32], strides = [1, 1]} : vector<8x128xf32> to vector<8x32xf32>
    %268 = vector.extract_strided_slice %265 {offsets = [0, 32], sizes = [8, 32], strides = [1, 1]} : vector<8x128xf32> to vector<8x32xf32>
    %269 = vector.extract_strided_slice %266 {offsets = [0, 64], sizes = [8, 32], strides = [1, 1]} : vector<8x128xf32> to vector<8x32xf32>
    %270 = vector.extract_strided_slice %265 {offsets = [0, 96], sizes = [8, 32], strides = [1, 1]} : vector<8x128xf32> to vector<8x32xf32>
    %271 = arith.mulf %268, %232 : vector<8x32xf32>
    %272 = arith.mulf %267, %269 : vector<8x32xf32>
    %273 = arith.addf %271, %272 : vector<8x32xf32>
    %274 = math.tanh %273 : vector<8x32xf32>
    %275 = arith.mulf %270, %274 : vector<8x32xf32>
    %cst_49 = arith.constant dense<0.000000e+00> : vector<8x128xf32>
    %276 = tpu.matmul %275, %5, %cst_49 {dimension_numbers = #tpu.dot_dimension_numbers<[1], [0], [0], [1], [0, 0, 1, 1], [], []>} : vector<8x32xf32>, vector<32x128xf32>, vector<8x128xf32> -> vector<8x128xf32>
    %cst_50 = arith.constant dense<0.000000e+00> : vector<8x128xf32>
    %277 = tpu.matmul %252, %4, %cst_50 {dimension_numbers = #tpu.dot_dimension_numbers<[1], [0], [0], [1], [0, 0, 1, 1], [], []>} : vector<8x32xf32>, vector<32x128xf32>, vector<8x128xf32> -> vector<8x128xf32>
    %278 = arith.addf %276, %277 : vector<8x128xf32>
    %279 = arith.negf %278 : vector<8x128xf32>
    %280 = math.exp %279 : vector<8x128xf32>
    %cst_51 = arith.constant 1.000000e+00 : f32
    %281 = vector.broadcast %cst_51 : f32 to vector<8x128xf32>
    %282 = arith.addf %281, %280 : vector<8x128xf32>
    %283 = arith.divf %281, %282 : vector<8x128xf32>
    %284 = math.tanh %278 : vector<8x128xf32>
    %285 = vector.extract_strided_slice %283 {offsets = [0, 0], sizes = [8, 32], strides = [1, 1]} : vector<8x128xf32> to vector<8x32xf32>
    %286 = vector.extract_strided_slice %283 {offsets = [0, 32], sizes = [8, 32], strides = [1, 1]} : vector<8x128xf32> to vector<8x32xf32>
    %287 = vector.extract_strided_slice %284 {offsets = [0, 64], sizes = [8, 32], strides = [1, 1]} : vector<8x128xf32> to vector<8x32xf32>
    %288 = vector.extract_strided_slice %283 {offsets = [0, 96], sizes = [8, 32], strides = [1, 1]} : vector<8x128xf32> to vector<8x32xf32>
    %289 = arith.mulf %286, %250 : vector<8x32xf32>
    %290 = arith.mulf %285, %287 : vector<8x32xf32>
    %291 = arith.addf %289, %290 : vector<8x32xf32>
    %292 = math.tanh %291 : vector<8x32xf32>
    %293 = arith.mulf %288, %292 : vector<8x32xf32>
    %294 = vector.extract_strided_slice %6 {offsets = [6, 0, 0], sizes = [1, 8, 1], strides = [1, 1, 1]} : vector<8x8x1xf32> to vector<1x8x1xf32>
    %295 = vector.shape_cast %294 : vector<1x8x1xf32> to vector<8x1xf32>
    %296 = vector.broadcast %295 : vector<8x1xf32> to vector<8x32xf32>
    %297 = arith.mulf %296, %293 : vector<8x32xf32>
    %298 = arith.addf %257, %297 : vector<8x32xf32>
    %299 = vector.extract_strided_slice %2 {offsets = [56, 0], sizes = [8, 128], strides = [1, 1]} : vector<64x128xf32> to vector<8x128xf32>
    %cst_52 = arith.constant dense<0.000000e+00> : vector<8x128xf32>
    %300 = tpu.matmul %275, %3, %cst_52 {dimension_numbers = #tpu.dot_dimension_numbers<[1], [0], [0], [1], [0, 0, 1, 1], [], []>} : vector<8x32xf32>, vector<32x128xf32>, vector<8x128xf32> -> vector<8x128xf32>
    %301 = arith.addf %299, %300 : vector<8x128xf32>
    %302 = arith.negf %301 : vector<8x128xf32>
    %303 = math.exp %302 : vector<8x128xf32>
    %cst_53 = arith.constant 1.000000e+00 : f32
    %304 = vector.broadcast %cst_53 : f32 to vector<8x128xf32>
    %305 = arith.addf %304, %303 : vector<8x128xf32>
    %306 = arith.divf %304, %305 : vector<8x128xf32>
    %307 = math.tanh %301 : vector<8x128xf32>
    %308 = vector.extract_strided_slice %306 {offsets = [0, 0], sizes = [8, 32], strides = [1, 1]} : vector<8x128xf32> to vector<8x32xf32>
    %309 = vector.extract_strided_slice %306 {offsets = [0, 32], sizes = [8, 32], strides = [1, 1]} : vector<8x128xf32> to vector<8x32xf32>
    %310 = vector.extract_strided_slice %307 {offsets = [0, 64], sizes = [8, 32], strides = [1, 1]} : vector<8x128xf32> to vector<8x32xf32>
    %311 = vector.extract_strided_slice %306 {offsets = [0, 96], sizes = [8, 32], strides = [1, 1]} : vector<8x128xf32> to vector<8x32xf32>
    %312 = arith.mulf %309, %273 : vector<8x32xf32>
    %313 = arith.mulf %308, %310 : vector<8x32xf32>
    %314 = arith.addf %312, %313 : vector<8x32xf32>
    %315 = math.tanh %314 : vector<8x32xf32>
    %316 = arith.mulf %311, %315 : vector<8x32xf32>
    %cst_54 = arith.constant dense<0.000000e+00> : vector<8x128xf32>
    %317 = tpu.matmul %316, %5, %cst_54 {dimension_numbers = #tpu.dot_dimension_numbers<[1], [0], [0], [1], [0, 0, 1, 1], [], []>} : vector<8x32xf32>, vector<32x128xf32>, vector<8x128xf32> -> vector<8x128xf32>
    %cst_55 = arith.constant dense<0.000000e+00> : vector<8x128xf32>
    %318 = tpu.matmul %293, %4, %cst_55 {dimension_numbers = #tpu.dot_dimension_numbers<[1], [0], [0], [1], [0, 0, 1, 1], [], []>} : vector<8x32xf32>, vector<32x128xf32>, vector<8x128xf32> -> vector<8x128xf32>
    %319 = arith.addf %317, %318 : vector<8x128xf32>
    %320 = arith.negf %319 : vector<8x128xf32>
    %321 = math.exp %320 : vector<8x128xf32>
    %cst_56 = arith.constant 1.000000e+00 : f32
    %322 = vector.broadcast %cst_56 : f32 to vector<8x128xf32>
    %323 = arith.addf %322, %321 : vector<8x128xf32>
    %324 = arith.divf %322, %323 : vector<8x128xf32>
    %325 = math.tanh %319 : vector<8x128xf32>
    %326 = vector.extract_strided_slice %324 {offsets = [0, 0], sizes = [8, 32], strides = [1, 1]} : vector<8x128xf32> to vector<8x32xf32>
    %327 = vector.extract_strided_slice %324 {offsets = [0, 32], sizes = [8, 32], strides = [1, 1]} : vector<8x128xf32> to vector<8x32xf32>
    %328 = vector.extract_strided_slice %325 {offsets = [0, 64], sizes = [8, 32], strides = [1, 1]} : vector<8x128xf32> to vector<8x32xf32>
    %329 = vector.extract_strided_slice %324 {offsets = [0, 96], sizes = [8, 32], strides = [1, 1]} : vector<8x128xf32> to vector<8x32xf32>
    %330 = arith.mulf %327, %291 : vector<8x32xf32>
    %331 = arith.mulf %326, %328 : vector<8x32xf32>
    %332 = arith.addf %330, %331 : vector<8x32xf32>
    %333 = math.tanh %332 : vector<8x32xf32>
    %334 = arith.mulf %329, %333 : vector<8x32xf32>
    %335 = vector.extract_strided_slice %6 {offsets = [7, 0, 0], sizes = [1, 8, 1], strides = [1, 1, 1]} : vector<8x8x1xf32> to vector<1x8x1xf32>
    %336 = vector.shape_cast %335 : vector<1x8x1xf32> to vector<8x1xf32>
    %337 = vector.broadcast %336 : vector<8x1xf32> to vector<8x32xf32>
    %338 = arith.mulf %337, %334 : vector<8x32xf32>
    %339 = arith.addf %298, %338 : vector<8x32xf32>
    %c0_57 = arith.constant 0 : index
    %c0_58 = arith.constant 0 : index
    %340 = vector.load %arg6[%c0_57, %c0_58] : memref<32x10xf32, #tpu.memory_space<vmem>>, vector<32x10xf32>
    %cst_59 = arith.constant dense<0.000000e+00> : vector<8x10xf32>
    %341 = tpu.matmul %339, %340, %cst_59 {dimension_numbers = #tpu.dot_dimension_numbers<[1], [0], [0], [1], [0, 0, 1, 1], [], []>} : vector<8x32xf32>, vector<32x10xf32>, vector<8x10xf32> -> vector<8x10xf32>
    %c0_60 = arith.constant 0 : index
    %c0_61 = arith.constant 0 : index
    %342 = vector.load %arg7[%c0_60, %c0_61] : memref<1x10xf32, #tpu.memory_space<vmem>>, vector<1x10xf32>
    %343 = vector.broadcast %342 : vector<1x10xf32> to vector<8x10xf32>
    %344 = arith.addf %341, %343 : vector<8x10xf32>
    %cst_62 = arith.constant dense<0xFF800000> : vector<8xf32>
    %345 = vector.multi_reduction <maximumf>, %344, %cst_62 [1] : vector<8x10xf32> to vector<8xf32>
    %346 = vector.shape_cast %345 : vector<8xf32> to vector<8x1xf32>
    %347 = vector.broadcast %346 : vector<8x1xf32> to vector<8x10xf32>
    %348 = arith.subf %344, %347 : vector<8x10xf32>
    %349 = math.exp %348 : vector<8x10xf32>
    %cst_63 = arith.constant dense<0.000000e+00> : vector<8xf32>
    %350 = vector.multi_reduction <add>, %349, %cst_63 [1] : vector<8x10xf32> to vector<8xf32>
    %351 = vector.shape_cast %350 : vector<8xf32> to vector<8x1xf32>
    %352 = math.log %351 : vector<8x1xf32>
    %353 = vector.broadcast %352 : vector<8x1xf32> to vector<8x10xf32>
    %354 = arith.subf %348, %353 : vector<8x10xf32>
    %c0_64 = arith.constant 0 : index
    %c0_65 = arith.constant 0 : index
    %355 = vector.load %arg8[%c0_64, %c0_65] : memref<8x10xf32, #tpu.memory_space<vmem>>, vector<8x10xf32>
    tpu.vector_store %arg8[%c0_64, %c0_65], %354 {strides = array<i32>} : memref<8x10xf32, #tpu.memory_space<vmem>>, vector<8x10xf32>,
    return
  }
}

</mosaic_0001>

<bundles_post_ra>
// kernel: tpu_custom_call.1
= control target key start
LH: loop header
LB: loop body
LE: loop exit
PB: predicated region body
PF: predicated region fallthrough
CT: control target
= control target key end

     0   :  { %v3159_v3 = vmov 0.0   ;;  %vm40_vm0 = vcmask 130048   ;;  %s3816_s0 = inlined_call_operand.vmem [shape: f32[8,8,1], index: 0, kind: input, shape index: {}]   ;;  %s3817_s1 = inlined_call_operand.vmem [shape: f32[64,16], index: 1, kind: input, shape index: {}]   ;;  %s3818_s2 = inlined_call_operand.vmem [shape: f32[16,128], index: 2, kind: input, shape index: {}]   ;;  %s3819_s3 = inlined_call_operand.vmem [shape: f32[32,128], index: 3, kind: input, shape index: {}]   ;;  %s3820_s4 = inlined_call_operand.vmem [shape: f32[32,128], index: 4, kind: input, shape index: {}]   ;;  %s3821_s5 = inlined_call_operand.vmem [shape: f32[32,128], index: 5, kind: input, shape index: {}]   ;;  %s3822_s6 = inlined_call_operand.vmem [shape: f32[32,10], index: 6, kind: input, shape index: {}]   ;;  %s3823_s7 = inlined_call_operand.vmem [shape: f32[1,10], index: 7, kind: input, shape index: {}]   ;;  %s3824_s8 = inlined_call_operand.hbm [shape: f32[8,10], index: 8, kind: output, shape index: {}]  }
   0x1   :  { %v39_v0 = vld [vmem:[%s3818_s2 + $0x8] sm:$0xff]  ;;  %v3216_v1 = vld [vmem:[%s3820_s4 + $0x18] sm:$0xff]  ;;  %v38_v2 = vld [vmem:[%s3818_s2] sm:$0xff]  ;;  %2710 = vmatprep.subr.mxu1 %v3159_v3 }
   0x2   :  { %2694 = vmatprep.subr.mxu0 %v39_v0  ;;  %v30_v4 = vld [vmem:[%s3817_s1] sm:$0xff]  ;;  %2711 = vmatpush3.msra.mxu1 %v3216_v1  ;;  %v3229_v5 = vld [vmem:[%s3820_s4 + $0x10] sm:$0xff]  ;;  %v31_v6 = vld [vmem:[%s3817_s1 + $0x8] sm:$0xff] }
   0x3   :  { %2695 = vmatpush3.msra.mxu0 %v39_v0 }
   0x4   :  { %13 = vsyncpa [#allocation3], 0  ;;  %2696 = vmatprep.subr.mxu0 %v38_v2  ;;  %2712 = vmatprep.subr.mxu1 %v3159_v3  ;;  %v3239_v7 = vld [vmem:[%s3820_s4 + $0x8] sm:$0xff]  ;;  %v3247_v8 = vld [vmem:[%s3820_s4] sm:$0xff]  ;;  %vm3160_vm1 = vmmov 0   ;;  %s3161_s20 = smov 64  }
   0x5   :  { %2697 = vmatpush3.msra.mxu0 %v38_v2  ;;  %2698 = vmatprep.mubr.msk.f32.mxu0 %vm40_vm0, %v30_v4  ;;  %s3162_s21 = smov 32   ;;  %v3269_v24 = vld [vmem:[%s3821_s5 + $0x18] sm:$0xff]  ;;  %v32_v26 = vld [vmem:[%s3817_s1 + $0x10] sm:$0xff]  ;;  %v3294_v29 = vld [vmem:[%s3821_s5 + $0x8] sm:$0xff]  ;;  %vm190_vm2 = vcmask 261120   ;;  %vm2483_vm3 = vcmask 80896  }
   0x6   :  { %2713 = vmatpush3.msra.mxu1 %v3229_v5  ;;  %2699 = vmatmul.mubr.msk.f32.vlgmr.msra.gmra.mxu0 %vm40_vm0, %v31_v6  ;;  %v3274_v25 = vld [vmem:[%s3819_s3 + $0x18] sm:$0xff]  ;;  %v3287_v28 = vld [vmem:[%s3821_s5 + $0x10] sm:$0xff]  ;;  %v34_v31 = vld [vmem:[%s3817_s1 + $0x20] sm:$0xff] }
   0x7   :  { %2714 = vmatprep.subr.mxu1 %v3159_v3  ;;  %2718 = vmatprep.mubr.msk.f32.mxu1 %vm3160_vm1, %v3159_v3  ;;  %v33_v27 = vld [vmem:[%s3817_s1 + $0x18] sm:$0xff]  ;;  %v3299_v30 = vld [vmem:[%s3819_s3 + $0x10] sm:$0xff]  ;;  %v35_v32 = vld [vmem:[%s3817_s1 + $0x28] sm:$0xff] }
   0x8   :  { %2715 = vmatpush3.msra.mxu1 %v3239_v7  ;;  %2732 = vmatprep.subr.mxu0 %v3159_v3  ;;  %v3314_v33 = vld [vmem:[%s3821_s5] sm:$0xff]  ;;  %v3323_v34 = vld [vmem:[%s3819_s3 + $0x8] sm:$0xff]  ;;  %v36_v35 = vld [vmem:[%s3817_s1 + $0x30] sm:$0xff] }
   0x9   :  { %2716 = vmatprep.subr.mxu1 %v3159_v3  ;;  %2733 = vmatpush3.msra.mxu0 %v3274_v25  ;;  %v37_v36 = vld [vmem:[%s3817_s1 + $0x38] sm:$0xff]  ;;  %v3342_v38 = vld [vmem:[%s3819_s3] sm:$0xff] }
   0xa   :  { %2717 = vmatpush3.msra.mxu1 %v3247_v8  ;;  %2701 = vmatprep.mubr.msk.f32.mxu0 %vm40_vm0, %v32_v26 }
   0xb   :  { %2719 = vmatmul.mubr.f32.vlgmr.msra.gmra.mxu1 %v3159_v3  ;;  %2721 = vmatprep.subr.mxu1 %v3159_v3 }
   0xc   :  { %2729 = vmatprep.mubr.msk.f32.mxu1 %vm3160_vm1, %v3159_v3  ;;  %2722 = vmatpush3.msra.mxu1 %v3269_v24 }
   0xd   :  { %2723 = vmatprep.subr.mxu1 %v3159_v3  ;;  %2702 = vmatmul.mubr.msk.f32.gmra.mxu0 %vm40_vm0, %v33_v27 }
   0xe   :  { %2724 = vmatpush3.msra.mxu1 %v3287_v28  ;;  %2734 = vmatprep.subr.mxu0 %v3159_v3 }
   0xf   :  { %2725 = vmatprep.subr.mxu1 %v3159_v3  ;;  %2735 = vmatpush3.msra.mxu0 %v3299_v30 }
  0x10   :  { %2726 = vmatpush3.msra.mxu1 %v3294_v29  ;;  %2704 = vmatprep.mubr.msk.f32.mxu0 %vm40_vm0, %v34_v31 }
  0x11   :  { %2727 = vmatprep.subr.mxu1 %v3159_v3  ;;  %2705 = vmatmul.mubr.msk.f32.gmra.mxu0 %vm40_vm0, %v35_v32 }
  0x12   :  { %2728 = vmatpush3.msra.mxu1 %v3314_v33  ;;  %2736 = vmatprep.subr.mxu0 %v3159_v3 }
  0x13   :  { %2730 = vmatmul.mubr.f32.vlgmr.msra.gmra.mxu1 %v3159_v3  ;;  %2737 = vmatpush3.msra.mxu0 %v3323_v34 }
  0x14   :  { %2743 = vmatprep.subr.mxu1 %v3159_v3  ;;  %2707 = vmatprep.mubr.msk.f32.mxu0 %vm40_vm0, %v36_v35 }
  0x15   :  { %2744 = vmatpush3.msra.mxu1 %v3216_v1  ;;  %2708 = vmatmul.mubr.msk.f32.gmra.mxu0 %vm40_vm0, %v37_v36 }
  0x16   :  { %2745 = vmatprep.subr.mxu1 %v3159_v3  ;;  %2738 = vmatprep.subr.mxu0 %v3159_v3 }
  0x17   :  { %2746 = vmatpush3.msra.mxu1 %v3229_v5  ;;  %2739 = vmatpush3.msra.mxu0 %v3342_v38 }
  0x18   :  { %2747 = vmatprep.subr.mxu1 %v3159_v3  ;;  %2740 = vmatprep.mubr.msk.f32.mxu0 %vm3160_vm1, %v3159_v3 }
  0x19   :  { %2748 = vmatpush3.msra.mxu1 %v3239_v7  ;;  %2751 = vmatprep.mubr.msk.f32.mxu1 %vm3160_vm1, %v3159_v3 }
  0x1a   :  { %2749 = vmatprep.subr.mxu1 %v3159_v3  ;;  %2754 = vmatprep.subr.mxu0 %v3159_v3 }
  0x1b   :  { %2750 = vmatpush3.msra.mxu1 %v3247_v8 }
  0x1c   :  { %2765 = vmatprep.subr.mxu1 %v3159_v3 }
  0xc6   :  { %v3259_v9 = vpop.f32.mrf.mxu0 }
  0xc8   :  { %v131_v10 = vpop.f32.mrf.mxu0 }
  0xcb   :  { %v260_v11 = vpop.f32.mrf.mxu1 }
  0xcc   :  { %v264_v12 = vadd.f32 %v260_v11, %v131_v10 }
  0xcd   :  { %v2720_v13 = vpop.f32.mrf.mxu1  ;;  %v3383_v44 = vpop.f32.mrf.mxu0 }
  0xce   :  { %2993 = vtanh.f32 %v264_v12  ;;  %v2519_v15 = vmul.f32 -1.442695, %v264_v12 }
  0xcf   :  { %v3385_v45 = vpop.f32.mrf.mxu0 }
  0xd0   :  { %2995 = vpow2.f32 %v2519_v15 }
  0xd1   :  { %v3387_v46 = vpop.f32.mrf.mxu0 }
  0xd3   :  { %v355_v41 = vpop.f32.mrf.mxu1  ;;  %v3389_v47 = vpop.f32.mrf.mxu0 }
  0xd5   :  { %v2731_v42 = vpop.f32.mrf.mxu1  ;;  %v3391_v48 = vpop.f32.mrf.mxu0 }
  0xd7   :  { %v3393_v49 = vpop.f32.mrf.mxu0 }
  0xdb   :  { %v2994_v14 = vpop.eup %2993 }
  0xdc   :  { %274 = vrot.lane.b32.xlu0 %v2994_v14, %s3161_s20 }
  0xdd   :  { %v2996_v16 = vpop.eup %2995 }
  0xde   :  { %v268_v17 = vadd.f32 1.0, %v2996_v16 }
  0xe0   :  { %2997 = vrcp.f32 %v268_v17 }
  0xed   :  { %v2998_v18 = vpop.eup %2997 }
  0xee   :  { %v272_v21 = vmul.f32 0.0, %v2998_v18 }
 0x14e   :  { %v275_v19 = vpop.permute.xlu0 %274 }
 0x14f   :  { %v277_v20 = vmul.f32 %v2998_v18, %v275_v19 }
 0x151   :  { %279 = vrot.lane.b32.xlu0 %v277_v20, %s3162_s21 }
 0x1c3   :  { %v280_v22 = vpop.permute.xlu0 %279 }
 0x1c4   :  { %v3263_v23 = vadd.f32 %v280_v22, %v272_v21 }
 0x1c6   :  { %2999 = vtanh.f32 %v3263_v23 }
 0x1d3   :  { %v3000_v37 = vpop.eup %2999 }
 0x1d4   :  { %285 = vrot.lane.b32.xlu1 %v3000_v37, %s3161_s20 }
 0x246   :  { %v286_v39 = vpop.permute.xlu1 %285 }
 0x247   :  { %v288_v40 = vmul.f32 %v2998_v18, %v286_v39 }
 0x249   :  { %360 = vrot.lane.b32.xlu1 %v288_v40, %s3162_s21 }
 0x2bb   :  { %v361_v43 = vpop.permute.xlu1 %360 }
 0x2bc   :  { %2741 = vmatmul.mubr.msk.f32.vlgmr.msra.gmra.mxu0 %vm190_vm2, %v361_v43  ;;  %2752 = vmatmul.mubr.msk.f32.vlgmr.msra.gmra.mxu1 %vm190_vm2, %v361_v43 }
 0x2bd   :  { %2755 = vmatpush3.msra.mxu0 %v3269_v24  ;;  %2766 = vmatpush3.msra.mxu1 %v3274_v25 }
 0x2be   :  { %2756 = vmatprep.subr.mxu0 %v3159_v3  ;;  %2767 = vmatprep.subr.mxu1 %v3159_v3 }
 0x2bf   :  { %2757 = vmatpush3.msra.mxu0 %v3287_v28  ;;  %2768 = vmatpush3.msra.mxu1 %v3299_v30 }
 0x2c0   :  { %2758 = vmatprep.subr.mxu0 %v3159_v3  ;;  %2769 = vmatprep.subr.mxu1 %v3159_v3 }
 0x2c1   :  { %2759 = vmatpush3.msra.mxu0 %v3294_v29  ;;  %2770 = vmatpush3.msra.mxu1 %v3323_v34 }
 0x2c2   :  { %2760 = vmatprep.subr.mxu0 %v3159_v3  ;;  %2771 = vmatprep.subr.mxu1 %v3159_v3 }
 0x2c3   :  { %2761 = vmatpush3.msra.mxu0 %v3314_v33  ;;  %2772 = vmatpush3.msra.mxu1 %v3342_v38 }
 0x2c4   :  { %2773 = vmatprep.mubr.msk.f32.mxu1 %vm3160_vm1, %v3159_v3  ;;  %2762 = vmatprep.mubr.msk.f32.mxu0 %vm3160_vm1, %v3159_v3 }
 0x2c5   :  { %2776 = vmatprep.subr.mxu0 %v3159_v3  ;;  %2787 = vmatprep.subr.mxu1 %v3159_v3 }
 0x37c   :  { %v430_v50 = vpop.f32.mrf.mxu0  ;;  %v531_v51 = vpop.f32.mrf.mxu1 }
 0x37d   :  { %v431_v52 = vadd.f32 %v430_v50, %v355_v41  ;;  %v535_v53 = vadd.f32 %v3259_v9, %v531_v51 }
 0x37e   :  { %v2742_v54 = vpop.f32.mrf.mxu0  ;;  %v2753_v55 = vpop.f32.mrf.mxu1 }
 0x37f   :  { %3001 = vtanh.f32 %v431_v52  ;;  %v2521_v58 = vmul.f32 -1.442695, %v431_v52  ;;  %v2523_v59 = vmul.f32 -1.442695, %v535_v53 }
 0x380   :  { %3003 = vtanh.f32 %v535_v53 }
 0x381   :  { %3005 = vpow2.f32 %v2521_v58 }
 0x382   :  { %3007 = vpow2.f32 %v2523_v59 }
 0x38c   :  { %v3002_v56 = vpop.eup %3001 }
 0x38d   :  { %v3004_v57 = vpop.eup %3003  ;;  %443 = vrot.lane.b32.xlu0 %v3002_v56, %s3161_s20 }
 0x38e   :  { %545 = vrot.lane.b32.xlu1 %v3004_v57, %s3161_s20  ;;  %v3006_v60 = vpop.eup %3005 }
 0x38f   :  { %v3008_v61 = vpop.eup %3007  ;;  %v437_v62 = vadd.f32 1.0, %v3006_v60 }
 0x390   :  { %v539_v63 = vadd.f32 1.0, %v3008_v61 }
 0x391   :  { %3009 = vrcp.f32 %v437_v62 }
 0x392   :  { %3011 = vrcp.f32 %v539_v63 }
 0x39e   :  { %v3010_v0 = vpop.eup %3009 }
 0x39f   :  { %v3012_v4 = vpop.eup %3011  ;;  %v441_v11 = vmul.f32 0.0, %v3010_v0 }
 0x3a0   :  { %v543_v12 = vmul.f32 %v3012_v4, %v3263_v23 }
 0x3ff   :  { %v444_v2 = vpop.permute.xlu0 %443 }
 0x400   :  { %v546_v6 = vpop.permute.xlu1 %545  ;;  %v446_v9 = vmul.f32 %v3010_v0, %v444_v2 }
 0x401   :  { %v548_v10 = vmul.f32 %v3012_v4, %v546_v6 }
 0x402   :  { %448 = vrot.lane.b32.xlu0 %v446_v9, %s3162_s21 }
 0x403   :  { %550 = vrot.lane.b32.xlu1 %v548_v10, %s3162_s21 }
 0x474   :  { %v449_v13 = vpop.permute.xlu0 %448 }
 0x475   :  { %v551_v14 = vpop.permute.xlu1 %550  ;;  %v3401_v15 = vadd.f32 %v449_v13, %v441_v11 }
 0x476   :  { %v3403_v16 = vadd.f32 %v551_v14, %v543_v12 }
 0x477   :  { %3013 = vtanh.f32 %v3401_v15 }
 0x478   :  { %3015 = vtanh.f32 %v3403_v16 }
 0x484   :  { %v3014_v17 = vpop.eup %3013 }
 0x485   :  { %v3016_v18 = vpop.eup %3015  ;;  %454 = vrot.lane.b32.xlu0 %v3014_v17, %s3161_s20 }
 0x486   :  { %556 = vrot.lane.b32.xlu1 %v3016_v18, %s3161_s20 }
 0x4f7   :  { %v455_v19 = vpop.permute.xlu0 %454 }
 0x4f8   :  { %v557_v20 = vpop.permute.xlu1 %556  ;;  %v3409_v21 = vmul.f32 %v3010_v0, %v455_v19 }
 0x4f9   :  { %v559_v22 = vmul.f32 %v3012_v4, %v557_v20 }
 0x4fa   :  { %561 = vrot.lane.b32.xlu0 %v3409_v21, %s3162_s21 }
 0x4fb   :  { %636 = vrot.lane.b32.xlu1 %v559_v22, %s3162_s21 }
 0x56c   :  { %v562_v23 = vpop.permute.xlu0 %561 }
 0x56d   :  { %v637_v26 = vpop.permute.xlu1 %636  ;;  %2763 = vmatmul.mubr.msk.f32.vlgmr.msra.gmra.mxu0 %vm190_vm2, %v562_v23 }
 0x56e   :  { %2774 = vmatmul.mubr.msk.f32.vlgmr.msra.gmra.mxu1 %vm190_vm2, %v637_v26  ;;  %2777 = vmatpush3.msra.mxu0 %v3216_v1 }
 0x56f   :  { %2778 = vmatprep.subr.mxu0 %v3159_v3  ;;  %2784 = vmatprep.mubr.msk.f32.mxu0 %vm3160_vm1, %v3159_v3 }
 0x570   :  { %2779 = vmatpush3.msra.mxu0 %v3229_v5  ;;  %2788 = vmatpush3.msra.mxu1 %v3269_v24 }
 0x571   :  { %2780 = vmatprep.subr.mxu0 %v3159_v3  ;;  %2789 = vmatprep.subr.mxu1 %v3159_v3 }
 0x572   :  { %2781 = vmatpush3.msra.mxu0 %v3239_v7  ;;  %2790 = vmatpush3.msra.mxu1 %v3287_v28 }
 0x573   :  { %2782 = vmatprep.subr.mxu0 %v3159_v3  ;;  %2791 = vmatprep.subr.mxu1 %v3159_v3 }
 0x574   :  { %2783 = vmatpush3.msra.mxu0 %v3247_v8  ;;  %2792 = vmatpush3.msra.mxu1 %v3294_v29 }
 0x575   :  { %2785 = vmatmul.mubr.msk.f32.vlgmr.msra.gmra.mxu0 %vm190_vm2, %v637_v26  ;;  %2793 = vmatprep.subr.mxu1 %v3159_v3 }
 0x576   :  { %2794 = vmatpush3.msra.mxu1 %v3314_v33  ;;  %2795 = vmatprep.mubr.msk.f32.mxu1 %vm3160_vm1, %v3159_v3 }
 0x577   :  { %2798 = vmatprep.subr.mxu0 %v3159_v3  ;;  %2809 = vmatprep.subr.mxu1 %v3159_v3 }
 0x578   :  { %2799 = vmatpush3.msra.mxu0 %v3274_v25  ;;  %2806 = vmatprep.mubr.msk.f32.mxu0 %vm3160_vm1, %v3159_v3 }
 0x579   :  { %2800 = vmatprep.subr.mxu0 %v3159_v3 }
 0x57a   :  { %2801 = vmatpush3.msra.mxu0 %v3299_v30 }
 0x57b   :  { %2802 = vmatprep.subr.mxu0 %v3159_v3 }
 0x57c   :  { %2803 = vmatpush3.msra.mxu0 %v3323_v34 }
 0x57d   :  { %2804 = vmatprep.subr.mxu0 %v3159_v3 }
 0x57e   :  { %2805 = vmatpush3.msra.mxu0 %v3342_v38 }
 0x57f   :  { %2820 = vmatprep.subr.mxu0 %v3159_v3 }
 0x62d   :  { %v631_v27 = vpop.f32.mrf.mxu0 }
 0x62e   :  { %v706_v31 = vpop.f32.mrf.mxu1 }
 0x62f   :  { %v707_v32 = vadd.f32 %v706_v31, %v631_v27  ;;  %v2764_v35 = vpop.f32.mrf.mxu0 }
 0x630   :  { %v2775_v36 = vpop.f32.mrf.mxu1 }
 0x631   :  { %3017 = vtanh.f32 %v707_v32  ;;  %v2526_v43 = vmul.f32 -1.442695, %v707_v32 }
 0x635   :  { %v807_v37 = vpop.f32.mrf.mxu0 }
 0x636   :  { %v811_v39 = vadd.f32 %v807_v37, %v3385_v45 }
 0x637   :  { %v2786_v40 = vpop.f32.mrf.mxu0 }
 0x638   :  { %3019 = vtanh.f32 %v811_v39  ;;  %v2528_v50 = vmul.f32 -1.442695, %v811_v39 }
 0x639   :  { %3021 = vpow2.f32 %v2526_v43 }
 0x63a   :  { %3023 = vpow2.f32 %v2528_v50 }
 0x63e   :  { %v3018_v41 = vpop.eup %3017 }
 0x63f   :  { %719 = vrot.lane.b32.xlu0 %v3018_v41, %s3161_s20 }
 0x645   :  { %v3020_v42 = vpop.eup %3019 }
 0x646   :  { %821 = vrot.lane.b32.xlu1 %v3020_v42, %s3161_s20  ;;  %v3022_v51 = vpop.eup %3021 }
 0x647   :  { %v713_v52 = vadd.f32 1.0, %v3022_v51  ;;  %v3024_v53 = vpop.eup %3023 }
 0x648   :  { %v815_v54 = vadd.f32 1.0, %v3024_v53 }
 0x649   :  { %3025 = vrcp.f32 %v713_v52 }
 0x64a   :  { %3027 = vrcp.f32 %v815_v54 }
 0x656   :  { %v3026_v55 = vpop.eup %3025 }
 0x657   :  { %v3028_v57 = vpop.eup %3027  ;;  %v717_v60 = vmul.f32 %v3026_v55, %v3401_v15 }
 0x658   :  { %v819_v63 = vmul.f32 %v3028_v57, %v3403_v16 }
 0x6b1   :  { %v720_v45 = vpop.permute.xlu0 %719 }
 0x6b2   :  { %v722_v56 = vmul.f32 %v3026_v55, %v720_v45 }
 0x6b4   :  { %724 = vrot.lane.b32.xlu0 %v722_v56, %s3162_s21 }
 0x6b8   :  { %v822_v58 = vpop.permute.xlu1 %821 }
 0x6b9   :  { %v824_v59 = vmul.f32 %v3028_v57, %v822_v58 }
 0x6bb   :  { %826 = vrot.lane.b32.xlu1 %v824_v59, %s3162_s21 }
 0x726   :  { %v725_v61 = vpop.permute.xlu0 %724 }
 0x727   :  { %v3453_v62 = vadd.f32 %v725_v61, %v717_v60 }
 0x729   :  { %3029 = vtanh.f32 %v3453_v62 }
 0x72d   :  { %v827_v0 = vpop.permute.xlu1 %826 }
 0x72e   :  { %v3457_v2 = vadd.f32 %v827_v0, %v819_v63 }
 0x730   :  { %3031 = vtanh.f32 %v3457_v2 }
 0x736   :  { %v3030_v4 = vpop.eup %3029 }
 0x737   :  { %730 = vrot.lane.b32.xlu0 %v3030_v4, %s3161_s20 }
 0x73d   :  { %v3032_v6 = vpop.eup %3031 }
 0x73e   :  { %832 = vrot.lane.b32.xlu1 %v3032_v6, %s3161_s20 }
 0x7a9   :  { %v731_v9 = vpop.permute.xlu0 %730 }
 0x7aa   :  { %v3462_v10 = vmul.f32 %v3026_v55, %v731_v9 }
 0x7ac   :  { %837 = vrot.lane.b32.xlu0 %v3462_v10, %s3162_s21 }
 0x7b0   :  { %v833_v11 = vpop.permute.xlu1 %832 }
 0x7b1   :  { %v835_v12 = vmul.f32 %v3028_v57, %v833_v11 }
 0x7b3   :  { %912 = vrot.lane.b32.xlu1 %v835_v12, %s3162_s21 }
 0x81e   :  { %v838_v13 = vpop.permute.xlu0 %837 }
 0x81f   :  { %2796 = vmatmul.mubr.msk.f32.vlgmr.msra.gmra.mxu1 %vm190_vm2, %v838_v13 }
 0x820   :  { %2810 = vmatpush3.msra.mxu1 %v3216_v1  ;;  %2817 = vmatprep.mubr.msk.f32.mxu1 %vm3160_vm1, %v3159_v3 }
 0x821   :  { %2811 = vmatprep.subr.mxu1 %v3159_v3 }
 0x822   :  { %2812 = vmatpush3.msra.mxu1 %v3229_v5 }
 0x823   :  { %2813 = vmatprep.subr.mxu1 %v3159_v3 }
 0x824   :  { %2814 = vmatpush3.msra.mxu1 %v3239_v7 }
 0x825   :  { %2815 = vmatprep.subr.mxu1 %v3159_v3  ;;  %v913_v14 = vpop.permute.xlu1 %912 }
 0x826   :  { %2816 = vmatpush3.msra.mxu1 %v3247_v8  ;;  %2807 = vmatmul.mubr.msk.f32.vlgmr.msra.gmra.mxu0 %vm190_vm2, %v913_v14 }
 0x827   :  { %2818 = vmatmul.mubr.msk.f32.vlgmr.msra.gmra.mxu1 %vm190_vm2, %v913_v14  ;;  %2821 = vmatpush3.msra.mxu0 %v3269_v24 }
 0x828   :  { %2831 = vmatprep.subr.mxu1 %v3159_v3  ;;  %2822 = vmatprep.subr.mxu0 %v3159_v3 }
 0x829   :  { %2832 = vmatpush3.msra.mxu1 %v3274_v25  ;;  %2823 = vmatpush3.msra.mxu0 %v3287_v28 }
 0x82a   :  { %2833 = vmatprep.subr.mxu1 %v3159_v3  ;;  %2824 = vmatprep.subr.mxu0 %v3159_v3 }
 0x82b   :  { %2834 = vmatpush3.msra.mxu1 %v3299_v30  ;;  %2825 = vmatpush3.msra.mxu0 %v3294_v29 }
 0x82c   :  { %2835 = vmatprep.subr.mxu1 %v3159_v3  ;;  %2826 = vmatprep.subr.mxu0 %v3159_v3 }
 0x82d   :  { %2836 = vmatpush3.msra.mxu1 %v3323_v34  ;;  %2827 = vmatpush3.msra.mxu0 %v3314_v33 }
 0x82e   :  { %2837 = vmatprep.subr.mxu1 %v3159_v3  ;;  %2839 = vmatprep.mubr.msk.f32.mxu1 %vm3160_vm1, %v3159_v3 }
 0x82f   :  { %2838 = vmatpush3.msra.mxu1 %v3342_v38  ;;  %2828 = vmatprep.mubr.msk.f32.mxu0 %vm3160_vm1, %v3159_v3 }
 0x830   :  { %2842 = vmatprep.subr.mxu0 %v3159_v3  ;;  %2853 = vmatprep.subr.mxu1 %v3159_v3 }
 0x8df   :  { %v907_v15 = vpop.f32.mrf.mxu1 }
 0x8e1   :  { %v2797_v16 = vpop.f32.mrf.mxu1 }
 0x8e6   :  { %v982_v17 = vpop.f32.mrf.mxu0 }
 0x8e7   :  { %v983_v18 = vadd.f32 %v982_v17, %v907_v15  ;;  %v1083_v19 = vpop.f32.mrf.mxu1 }
 0x8e8   :  { %v1087_v20 = vadd.f32 %v3383_v44, %v1083_v19  ;;  %v2808_v22 = vpop.f32.mrf.mxu0 }
 0x8e9   :  { %3033 = vtanh.f32 %v983_v18  ;;  %v2819_v23 = vpop.f32.mrf.mxu1  ;;  %v2531_v31 = vmul.f32 -1.442695, %v983_v18 }
 0x8ea   :  { %3035 = vtanh.f32 %v1087_v20  ;;  %v2533_v32 = vmul.f32 -1.442695, %v1087_v20 }
 0x8eb   :  { %3037 = vpow2.f32 %v2531_v31 }
 0x8ec   :  { %3039 = vpow2.f32 %v2533_v32 }
 0x8f6   :  { %v3034_v26 = vpop.eup %3033 }
 0x8f7   :  { %v3036_v27 = vpop.eup %3035  ;;  %995 = vrot.lane.b32.xlu0 %v3034_v26, %s3161_s20 }
 0x8f8   :  { %1097 = vrot.lane.b32.xlu1 %v3036_v27, %s3161_s20  ;;  %v3038_v35 = vpop.eup %3037 }
 0x8f9   :  { %v3040_v36 = vpop.eup %3039  ;;  %v989_v37 = vadd.f32 1.0, %v3038_v35 }
 0x8fa   :  { %v1091_v39 = vadd.f32 1.0, %v3040_v36 }
 0x8fb   :  { %3041 = vrcp.f32 %v989_v37 }
 0x8fc   :  { %3043 = vrcp.f32 %v1091_v39 }
 0x908   :  { %v3042_v44 = vpop.eup %3041 }
 0x909   :  { %v3044_v41 = vpop.eup %3043  ;;  %v993_v51 = vmul.f32 %v3042_v44, %v3453_v62 }
 0x90a   :  { %v1095_v52 = vmul.f32 %v3044_v41, %v3457_v2 }
 0x969   :  { %v996_v40 = vpop.permute.xlu0 %995 }
 0x96a   :  { %v1098_v42 = vpop.permute.xlu1 %1097  ;;  %v998_v43 = vmul.f32 %v3042_v44, %v996_v40 }
 0x96b   :  { %v1100_v50 = vmul.f32 %v3044_v41, %v1098_v42 }
 0x96c   :  { %1000 = vrot.lane.b32.xlu0 %v998_v43, %s3162_s21 }
 0x96d   :  { %1102 = vrot.lane.b32.xlu1 %v1100_v50, %s3162_s21 }
 0x9de   :  { %v1001_v53 = vpop.permute.xlu0 %1000 }
 0x9df   :  { %v1103_v54 = vpop.permute.xlu1 %1102  ;;  %v3507_v55 = vadd.f32 %v1001_v53, %v993_v51 }
 0x9e0   :  { %v3509_v45 = vadd.f32 %v1103_v54, %v1095_v52 }
 0x9e1   :  { %3045 = vtanh.f32 %v3507_v55 }
 0x9e2   :  { %3047 = vtanh.f32 %v3509_v45 }
 0x9ee   :  { %v3046_v56 = vpop.eup %3045 }
 0x9ef   :  { %v3048_v57 = vpop.eup %3047  ;;  %1006 = vrot.lane.b32.xlu0 %v3046_v56, %s3161_s20 }
 0x9f0   :  { %1108 = vrot.lane.b32.xlu1 %v3048_v57, %s3161_s20 }
 0xa61   :  { %v1007_v58 = vpop.permute.xlu0 %1006 }
 0xa62   :  { %v1109_v59 = vpop.permute.xlu1 %1108  ;;  %v3515_v60 = vmul.f32 %v3042_v44, %v1007_v58 }
 0xa63   :  { %v1111_v61 = vmul.f32 %v3044_v41, %v1109_v59 }
 0xa64   :  { %1113 = vrot.lane.b32.xlu0 %v3515_v60, %s3162_s21 }
 0xa65   :  { %1188 = vrot.lane.b32.xlu1 %v1111_v61, %s3162_s21 }
 0xad6   :  { %v1114_v62 = vpop.permute.xlu0 %1113 }
 0xad7   :  { %v1189_v63 = vpop.permute.xlu1 %1188  ;;  %2829 = vmatmul.mubr.msk.f32.vlgmr.msra.gmra.mxu0 %vm190_vm2, %v1114_v62 }
 0xad8   :  { %2840 = vmatmul.mubr.msk.f32.vlgmr.msra.gmra.mxu1 %vm190_vm2, %v1189_v63  ;;  %2843 = vmatpush3.msra.mxu0 %v3216_v1 }
 0xad9   :  { %2844 = vmatprep.subr.mxu0 %v3159_v3  ;;  %2850 = vmatprep.mubr.msk.f32.mxu0 %vm3160_vm1, %v3159_v3 }
 0xada   :  { %2845 = vmatpush3.msra.mxu0 %v3229_v5  ;;  %2854 = vmatpush3.msra.mxu1 %v3269_v24 }
 0xadb   :  { %2846 = vmatprep.subr.mxu0 %v3159_v3  ;;  %2855 = vmatprep.subr.mxu1 %v3159_v3 }
 0xadc   :  { %2847 = vmatpush3.msra.mxu0 %v3239_v7  ;;  %2856 = vmatpush3.msra.mxu1 %v3287_v28 }
 0xadd   :  { %2848 = vmatprep.subr.mxu0 %v3159_v3  ;;  %2857 = vmatprep.subr.mxu1 %v3159_v3 }
 0xade   :  { %2849 = vmatpush3.msra.mxu0 %v3247_v8  ;;  %2858 = vmatpush3.msra.mxu1 %v3294_v29 }
 0xadf   :  { %2851 = vmatmul.mubr.msk.f32.vlgmr.msra.gmra.mxu0 %vm190_vm2, %v1189_v63  ;;  %2859 = vmatprep.subr.mxu1 %v3159_v3 }
 0xae0   :  { %2860 = vmatpush3.msra.mxu1 %v3314_v33  ;;  %2861 = vmatprep.mubr.msk.f32.mxu1 %vm3160_vm1, %v3159_v3 }
 0xae1   :  { %2864 = vmatprep.subr.mxu0 %v3159_v3  ;;  %2875 = vmatprep.subr.mxu1 %v3159_v3 }
 0xae2   :  { %2865 = vmatpush3.msra.mxu0 %v3274_v25  ;;  %2872 = vmatprep.mubr.msk.f32.mxu0 %vm3160_vm1, %v3159_v3 }
 0xae3   :  { %2866 = vmatprep.subr.mxu0 %v3159_v3 }
 0xae4   :  { %2867 = vmatpush3.msra.mxu0 %v3299_v30 }
 0xae5   :  { %2868 = vmatprep.subr.mxu0 %v3159_v3 }
 0xae6   :  { %2869 = vmatpush3.msra.mxu0 %v3323_v34 }
 0xae7   :  { %2870 = vmatprep.subr.mxu0 %v3159_v3 }
 0xae8   :  { %2871 = vmatpush3.msra.mxu0 %v3342_v38 }
 0xae9   :  { %2886 = vmatprep.subr.mxu0 %v3159_v3 }
 0xb97   :  { %v1183_v0 = vpop.f32.mrf.mxu0 }
 0xb98   :  { %v1258_v2 = vpop.f32.mrf.mxu1 }
 0xb99   :  { %v1259_v4 = vadd.f32 %v1258_v2, %v1183_v0  ;;  %v2830_v6 = vpop.f32.mrf.mxu0 }
 0xb9a   :  { %v2841_v9 = vpop.f32.mrf.mxu1 }
 0xb9b   :  { %3049 = vtanh.f32 %v1259_v4  ;;  %v2536_v16 = vmul.f32 -1.442695, %v1259_v4 }
 0xb9f   :  { %v1359_v11 = vpop.f32.mrf.mxu0 }
 0xba0   :  { %v1363_v12 = vadd.f32 %v1359_v11, %v3389_v47 }
 0xba1   :  { %v2852_v13 = vpop.f32.mrf.mxu0 }
 0xba2   :  { %3051 = vtanh.f32 %v1363_v12  ;;  %v2538_v17 = vmul.f32 -1.442695, %v1363_v12 }
 0xba3   :  { %3053 = vpow2.f32 %v2536_v16 }
 0xba4   :  { %3055 = vpow2.f32 %v2538_v17 }
 0xba8   :  { %v3050_v14 = vpop.eup %3049 }
 0xba9   :  { %1271 = vrot.lane.b32.xlu0 %v3050_v14, %s3161_s20 }
 0xbaf   :  { %v3052_v15 = vpop.eup %3051 }
 0xbb0   :  { %1373 = vrot.lane.b32.xlu1 %v3052_v15, %s3161_s20  ;;  %v3054_v18 = vpop.eup %3053 }
 0xbb1   :  { %v1265_v19 = vadd.f32 1.0, %v3054_v18  ;;  %v3056_v20 = vpop.eup %3055 }
 0xbb2   :  { %v1367_v22 = vadd.f32 1.0, %v3056_v20 }
 0xbb3   :  { %3057 = vrcp.f32 %v1265_v19 }
 0xbb4   :  { %3059 = vrcp.f32 %v1367_v22 }
 0xbc0   :  { %v3058_v23 = vpop.eup %3057 }
 0xbc1   :  { %v3060_v27 = vpop.eup %3059  ;;  %v1269_v35 = vmul.f32 %v3058_v23, %v3507_v55 }
 0xbc2   :  { %v1371_v39 = vmul.f32 %v3060_v27, %v3509_v45 }
 0xc1b   :  { %v1272_v47 = vpop.permute.xlu0 %1271 }
 0xc1c   :  { %v1274_v26 = vmul.f32 %v3058_v23, %v1272_v47 }
 0xc1e   :  { %1276 = vrot.lane.b32.xlu0 %v1274_v26, %s3162_s21 }
 0xc22   :  { %v1374_v31 = vpop.permute.xlu1 %1373 }
 0xc23   :  { %v1376_v32 = vmul.f32 %v3060_v27, %v1374_v31 }
 0xc25   :  { %1378 = vrot.lane.b32.xlu1 %v1376_v32, %s3162_s21 }
 0xc90   :  { %v1277_v36 = vpop.permute.xlu0 %1276 }
 0xc91   :  { %v3559_v37 = vadd.f32 %v1277_v36, %v1269_v35 }
 0xc93   :  { %3061 = vtanh.f32 %v3559_v37 }
 0xc97   :  { %v1379_v44 = vpop.permute.xlu1 %1378 }
 0xc98   :  { %v3563_v40 = vadd.f32 %v1379_v44, %v1371_v39  ;;  %v3631_v39 = vld [vmem:[%s3820_s4 + $0x18] sm:$0xff] }
 0xc9a   :  { %3063 = vtanh.f32 %v3563_v40 }
 0xca0   :  { %v3062_v41 = vpop.eup %3061 }
 0xca1   :  { %1282 = vrot.lane.b32.xlu0 %v3062_v41, %s3161_s20 }
 0xca7   :  { %v3064_v42 = vpop.eup %3063 }
 0xca8   :  { %1384 = vrot.lane.b32.xlu1 %v3064_v42, %s3161_s20 }
 0xd13   :  { %v1283_v43 = vpop.permute.xlu0 %1282 }
 0xd14   :  { %v3568_v50 = vmul.f32 %v3058_v23, %v1283_v43 }
 0xd16   :  { %1389 = vrot.lane.b32.xlu0 %v3568_v50, %s3162_s21 }
 0xd1a   :  { %v1385_v51 = vpop.permute.xlu1 %1384 }
 0xd1b   :  { %v1387_v52 = vmul.f32 %v3060_v27, %v1385_v51 }
 0xd1d   :  { %1464 = vrot.lane.b32.xlu1 %v1387_v52, %s3162_s21 }
 0xd88   :  { %v1390_v53 = vpop.permute.xlu0 %1389 }
 0xd89   :  { %2862 = vmatmul.mubr.msk.f32.vlgmr.msra.gmra.mxu1 %vm190_vm2, %v1390_v53 }
 0xd8a   :  { %2876 = vmatpush3.msra.mxu1 %v3216_v1  ;;  %2883 = vmatprep.mubr.msk.f32.mxu1 %vm3160_vm1, %v3159_v3 }
 0xd8b   :  { %2877 = vmatprep.subr.mxu1 %v3159_v3 }
 0xd8c   :  { %2878 = vmatpush3.msra.mxu1 %v3229_v5 }
 0xd8d   :  { %2879 = vmatprep.subr.mxu1 %v3159_v3 }
 0xd8e   :  { %2880 = vmatpush3.msra.mxu1 %v3239_v7 }
 0xd8f   :  { %2881 = vmatprep.subr.mxu1 %v3159_v3  ;;  %v1465_v54 = vpop.permute.xlu1 %1464 }
 0xd90   :  { %2882 = vmatpush3.msra.mxu1 %v3247_v8  ;;  %2873 = vmatmul.mubr.msk.f32.vlgmr.msra.gmra.mxu0 %vm190_vm2, %v1465_v54 }
 0xd91   :  { %2884 = vmatmul.mubr.msk.f32.vlgmr.msra.gmra.mxu1 %vm190_vm2, %v1465_v54  ;;  %2887 = vmatpush3.msra.mxu0 %v3269_v24 }
 0xd92   :  { %2897 = vmatprep.subr.mxu1 %v3159_v3  ;;  %2888 = vmatprep.subr.mxu0 %v3159_v3 }
 0xd93   :  { %2898 = vmatpush3.msra.mxu1 %v3274_v25  ;;  %2889 = vmatpush3.msra.mxu0 %v3287_v28 }
 0xd94   :  { %2899 = vmatprep.subr.mxu1 %v3159_v3  ;;  %2890 = vmatprep.subr.mxu0 %v3159_v3 }
 0xd95   :  { %2900 = vmatpush3.msra.mxu1 %v3299_v30  ;;  %2891 = vmatpush3.msra.mxu0 %v3294_v29 }
 0xd96   :  { %2901 = vmatprep.subr.mxu1 %v3159_v3  ;;  %2892 = vmatprep.subr.mxu0 %v3159_v3 }
 0xd97   :  { %2902 = vmatpush3.msra.mxu1 %v3323_v34  ;;  %2893 = vmatpush3.msra.mxu0 %v3314_v33 }
 0xd98   :  { %2903 = vmatprep.subr.mxu1 %v3159_v3  ;;  %2905 = vmatprep.mubr.msk.f32.mxu1 %vm3160_vm1, %v3159_v3 }
 0xd99   :  { %2904 = vmatpush3.msra.mxu1 %v3342_v38  ;;  %2894 = vmatprep.mubr.msk.f32.mxu0 %vm3160_vm1, %v3159_v3 }
 0xd9a   :  { %2908 = vmatprep.subr.mxu0 %v3159_v3  ;;  %2919 = vmatprep.subr.mxu1 %v3159_v3 }
 0xe49   :  { %v1459_v1 = vpop.f32.mrf.mxu1 }
 0xe4b   :  { %v2863_v55 = vpop.f32.mrf.mxu1 }
 0xe50   :  { %v1534_v45 = vpop.f32.mrf.mxu0 }
 0xe51   :  { %v1535_v56 = vadd.f32 %v1534_v45, %v1459_v1  ;;  %v1635_v57 = vpop.f32.mrf.mxu1 }
 0xe52   :  { %v1639_v58 = vadd.f32 %v3387_v46, %v1635_v57  ;;  %v2874_v59 = vpop.f32.mrf.mxu0 }
 0xe53   :  { %3065 = vtanh.f32 %v1535_v56  ;;  %v2885_v61 = vpop.f32.mrf.mxu1  ;;  %v2541_v0 = vmul.f32 -1.442695, %v1535_v56 }
 0xe54   :  { %3067 = vtanh.f32 %v1639_v58  ;;  %v2543_v2 = vmul.f32 -1.442695, %v1639_v58 }
 0xe55   :  { %3069 = vpow2.f32 %v2541_v0 }
 0xe56   :  { %3071 = vpow2.f32 %v2543_v2 }
 0xe60   :  { %v3066_v62 = vpop.eup %3065 }
 0xe61   :  { %v3068_v63 = vpop.eup %3067  ;;  %1547 = vrot.lane.b32.xlu0 %v3066_v62, %s3161_s20 }
 0xe62   :  { %1649 = vrot.lane.b32.xlu1 %v3068_v63, %s3161_s20  ;;  %v3070_v4 = vpop.eup %3069 }
 0xe63   :  { %v3072_v6 = vpop.eup %3071  ;;  %v1541_v9 = vadd.f32 1.0, %v3070_v4 }
 0xe64   :  { %v1643_v11 = vadd.f32 1.0, %v3072_v6 }
 0xe65   :  { %3073 = vrcp.f32 %v1541_v9  ;;  %v3126_v9 = vld [vmem:[%s3820_s4 + $0x10] sm:$0xff] }
 0xe66   :  { %3075 = vrcp.f32 %v1643_v11  ;;  %v3127_v11 = vld [vmem:[%s3820_s4 + $0x8] sm:$0xff] }
 0xe72   :  { %v3074_v46 = vpop.eup %3073 }
 0xe73   :  { %v3076_v13 = vpop.eup %3075  ;;  %v1545_v17 = vmul.f32 %v3074_v46, %v3559_v37 }
 0xe74   :  { %v1647_v18 = vmul.f32 %v3076_v13, %v3563_v40 }
 0xed3   :  { %v1548_v12 = vpop.permute.xlu0 %1547 }
 0xed4   :  { %v1650_v14 = vpop.permute.xlu1 %1649  ;;  %v1550_v15 = vmul.f32 %v3074_v46, %v1548_v12  ;;  %v3128_v12 = vld [vmem:[%s3820_s4] sm:$0xff] }
 0xed5   :  { %v1652_v16 = vmul.f32 %v3076_v13, %v1650_v14  ;;  %v3130_v14 = vld [vmem:[%s3819_s3 + $0x18] sm:$0xff] }
 0xed6   :  { %1552 = vrot.lane.b32.xlu0 %v1550_v15, %s3162_s21  ;;  %v3131_v15 = vld [vmem:[%s3821_s5 + $0x10] sm:$0xff] }
 0xed7   :  { %1654 = vrot.lane.b32.xlu1 %v1652_v16, %s3162_s21  ;;  %v3132_v16 = vld [vmem:[%s3819_s3 + $0x10] sm:$0xff] }
 0xf48   :  { %v1553_v19 = vpop.permute.xlu0 %1552 }
 0xf49   :  { %v1655_v20 = vpop.permute.xlu1 %1654  ;;  %v3613_v22 = vadd.f32 %v1553_v19, %v1545_v17  ;;  %v3133_v17 = vld [vmem:[%s3821_s5 + $0x8] sm:$0xff]  ;;  %v3135_v19 = vld [vmem:[%s3819_s3] sm:$0xff] }
 0xf4a   :  { %v3615_v23 = vadd.f32 %v1655_v20, %v1647_v18  ;;  %v3134_v18 = vld [vmem:[%s3819_s3 + $0x8] sm:$0xff]  ;;  %v3136_v20 = vld [vmem:[%s3821_s5] sm:$0xff] }
 0xf4b   :  { %3077 = vtanh.f32 %v3613_v22 }
 0xf4c   :  { %3079 = vtanh.f32 %v3615_v23 }
 0xf58   :  { %v3078_v47 = vpop.eup %3077 }
 0xf59   :  { %v3080_v26 = vpop.eup %3079  ;;  %1558 = vrot.lane.b32.xlu0 %v3078_v47, %s3161_s20 }
 0xf5a   :  { %1660 = vrot.lane.b32.xlu1 %v3080_v26, %s3161_s20 }
 0xfcb   :  { %v1559_v27 = vpop.permute.xlu0 %1558 }
 0xfcc   :  { %v1661_v31 = vpop.permute.xlu1 %1660  ;;  %v3621_v32 = vmul.f32 %v3074_v46, %v1559_v27 }
 0xfcd   :  { %v1663_v35 = vmul.f32 %v3076_v13, %v1661_v31  ;;  %v3129_v13 = vld [vmem:[%s3821_s5 + $0x18] sm:$0xff] }
 0xfce   :  { %1665 = vrot.lane.b32.xlu0 %v3621_v32, %s3162_s21 }
 0xfcf   :  { %1740 = vrot.lane.b32.xlu1 %v1663_v35, %s3162_s21 }
0x1040   :  { %v1666_v36 = vpop.permute.xlu0 %1665 }
0x1041   :  { %v1741_v37 = vpop.permute.xlu1 %1740  ;;  %2895 = vmatmul.mubr.msk.f32.vlgmr.msra.gmra.mxu0 %vm190_vm2, %v1666_v36 }
0x1042   :  { %2906 = vmatmul.mubr.msk.f32.vlgmr.msra.gmra.mxu1 %vm190_vm2, %v1741_v37  ;;  %2909 = vmatpush3.msra.mxu0 %v3631_v39 }
0x1043   :  { %2910 = vmatprep.subr.mxu0 %v3159_v3  ;;  %2916 = vmatprep.mubr.msk.f32.mxu0 %vm3160_vm1, %v3159_v3 }
0x1044   :  { %2911 = vmatpush3.msra.mxu0 %v3229_v5  ;;  %2920 = vmatpush3.msra.mxu1 %v3269_v24 }
0x1045   :  { %2912 = vmatprep.subr.mxu0 %v3159_v3  ;;  %2921 = vmatprep.subr.mxu1 %v3159_v3 }
0x1046   :  { %2913 = vmatpush3.msra.mxu0 %v3239_v7  ;;  %2922 = vmatpush3.msra.mxu1 %v3287_v28 }
0x1047   :  { %2914 = vmatprep.subr.mxu0 %v3159_v3  ;;  %2923 = vmatprep.subr.mxu1 %v3159_v3 }
0x1048   :  { %2915 = vmatpush3.msra.mxu0 %v3247_v8  ;;  %2924 = vmatpush3.msra.mxu1 %v3294_v29 }
0x1049   :  { %2917 = vmatmul.mubr.msk.f32.vlgmr.msra.gmra.mxu0 %vm190_vm2, %v1741_v37  ;;  %2925 = vmatprep.subr.mxu1 %v3159_v3 }
0x104a   :  { %2926 = vmatpush3.msra.mxu1 %v3314_v33  ;;  %2927 = vmatprep.mubr.msk.f32.mxu1 %vm3160_vm1, %v3159_v3 }
0x104b   :  { %2930 = vmatprep.subr.mxu0 %v3159_v3  ;;  %2941 = vmatprep.subr.mxu1 %v3159_v3 }
0x104c   :  { %2931 = vmatpush3.msra.mxu0 %v3274_v25  ;;  %2938 = vmatprep.mubr.msk.f32.mxu0 %vm3160_vm1, %v3159_v3 }
0x104d   :  { %2932 = vmatprep.subr.mxu0 %v3159_v3 }
0x104e   :  { %2933 = vmatpush3.msra.mxu0 %v3299_v30 }
0x104f   :  { %2934 = vmatprep.subr.mxu0 %v3159_v3 }
0x1050   :  { %2935 = vmatpush3.msra.mxu0 %v3323_v34 }
0x1051   :  { %2936 = vmatprep.subr.mxu0 %v3159_v3 }
0x1052   :  { %2937 = vmatpush3.msra.mxu0 %v3342_v38 }
0x1053   :  { %2952 = vmatprep.subr.mxu0 %v3159_v3 }
0x1101   :  { %v1735_v5 = vpop.f32.mrf.mxu0 }
0x1102   :  { %v1810_v7 = vpop.f32.mrf.mxu1 }
0x1103   :  { %v1811_v8 = vadd.f32 %v1810_v7, %v1735_v5  ;;  %v2896_v24 = vpop.f32.mrf.mxu0 }
0x1104   :  { %v2907_v25 = vpop.f32.mrf.mxu1 }
0x1105   :  { %3081 = vtanh.f32 %v1811_v8  ;;  %v2546_v38 = vmul.f32 -1.442695, %v1811_v8 }
0x1109   :  { %v1911_v28 = vpop.f32.mrf.mxu0 }
0x110a   :  { %v1915_v29 = vadd.f32 %v1911_v28, %v3393_v49 }
0x110b   :  { %v2918_v30 = vpop.f32.mrf.mxu0 }
0x110c   :  { %3083 = vtanh.f32 %v1915_v29  ;;  %v2548_v44 = vmul.f32 -1.442695, %v1915_v29 }
0x110d   :  { %3085 = vpow2.f32 %v2546_v38 }
0x110e   :  { %3087 = vpow2.f32 %v2548_v44 }
0x1112   :  { %v3082_v33 = vpop.eup %3081 }
0x1113   :  { %1823 = vrot.lane.b32.xlu0 %v3082_v33, %s3161_s20 }
0x1119   :  { %v3084_v34 = vpop.eup %3083 }
0x111a   :  { %1925 = vrot.lane.b32.xlu1 %v3084_v34, %s3161_s20  ;;  %v3086_v40 = vpop.eup %3085 }
0x111b   :  { %v1817_v41 = vadd.f32 1.0, %v3086_v40  ;;  %v3088_v42 = vpop.eup %3087 }
0x111c   :  { %v1919_v43 = vadd.f32 1.0, %v3088_v42 }
0x111d   :  { %3089 = vrcp.f32 %v1817_v41 }
0x111e   :  { %3091 = vrcp.f32 %v1919_v43 }
0x112a   :  { %v3090_v51 = vpop.eup %3089 }
0x112b   :  { %v3092_v53 = vpop.eup %3091  ;;  %v1821_v55 = vmul.f32 %v3090_v51, %v3613_v22 }
0x112c   :  { %v1923_v57 = vmul.f32 %v3092_v53, %v3615_v23 }
0x1185   :  { %v1824_v49 = vpop.permute.xlu0 %1823 }
0x1186   :  { %v1826_v52 = vmul.f32 %v3090_v51, %v1824_v49 }
0x1188   :  { %1828 = vrot.lane.b32.xlu0 %v1826_v52, %s3162_s21 }
0x118c   :  { %v1926_v54 = vpop.permute.xlu1 %1925 }
0x118d   :  { %v1928_v1 = vmul.f32 %v3092_v53, %v1926_v54 }
0x118f   :  { %1930 = vrot.lane.b32.xlu1 %v1928_v1, %s3162_s21 }
0x11fa   :  { %v1829_v45 = vpop.permute.xlu0 %1828 }
0x11fb   :  { %v3670_v56 = vadd.f32 %v1829_v45, %v1821_v55 }
0x11fd   :  { %3093 = vtanh.f32 %v3670_v56 }
0x1201   :  { %v1931_v58 = vpop.permute.xlu1 %1930 }
0x1202   :  { %v3674_v59 = vadd.f32 %v1931_v58, %v1923_v57  ;;  %v3163_v57 = vmov 0  }
0x1203   :  { %2991 = vset.pattern.permute.xlu0 %v3163_v57  ;;  %2992 = vset.pattern.permute.xlu1 %v3163_v57 }
0x1204   :  { %3095 = vtanh.f32 %v3674_v59 }
0x120a   :  { %v3094_v61 = vpop.eup %3093 }
0x120b   :  { %1834 = vrot.lane.b32.xlu0 %v3094_v61, %s3161_s20 }
0x1211   :  { %v3096_v62 = vpop.eup %3095 }
0x1212   :  { %1936 = vrot.lane.b32.xlu1 %v3096_v62, %s3161_s20 }
0x127d   :  { %v1835_v63 = vpop.permute.xlu0 %1834 }
0x127e   :  { %v3679_v0 = vmul.f32 %v3090_v51, %v1835_v63 }
0x1280   :  { %1941 = vrot.lane.b32.xlu0 %v3679_v0, %s3162_s21 }
0x1284   :  { %v1937_v2 = vpop.permute.xlu1 %1936 }
0x1285   :  { %v1939_v4 = vmul.f32 %v3092_v53, %v1937_v2 }
0x1287   :  { %2016 = vrot.lane.b32.xlu1 %v1939_v4, %s3162_s21  ;;  %v182_v4 = vld [vmem:[%s3816_s0] sm:$0xff] }
0x12f2   :  { %v1942_v6 = vpop.permute.xlu0 %1941 }
0x12f3   :  { %2928 = vmatmul.mubr.msk.f32.vlgmr.msra.gmra.mxu1 %vm190_vm2, %v1942_v6  ;;  %v185_v6 = vld [vmem:[%s3816_s0 + $0x18] sm:$0xff] }
0x12f4   :  { %2942 = vmatpush3.msra.mxu1 %v3631_v39  ;;  %2949 = vmatprep.mubr.msk.f32.mxu1 %vm3160_vm1, %v3159_v3 }
0x12f5   :  { %2943 = vmatprep.subr.mxu1 %v3159_v3 }
0x12f6   :  { %2944 = vmatpush3.msra.mxu1 %v3126_v9  ;;  %v187_v9 = vld [vmem:[%s3816_s0 + $0x28] sm:$0xff] }
0x12f7   :  { %2945 = vmatprep.subr.mxu1 %v3159_v3 }
0x12f8   :  { %2946 = vmatpush3.msra.mxu1 %v3127_v11  ;;  %v189_v11 = vld [vmem:[%s3816_s0 + $0x38] sm:$0xff] }
0x12f9   :  { %2947 = vmatprep.subr.mxu1 %v3159_v3  ;;  %v2017_v46 = vpop.permute.xlu1 %2016 }
0x12fa   :  { %2948 = vmatpush3.msra.mxu1 %v3128_v12  ;;  %2939 = vmatmul.mubr.msk.f32.vlgmr.msra.gmra.mxu0 %vm190_vm2, %v2017_v46 }
0x12fb   :  { %2950 = vmatmul.mubr.msk.f32.vlgmr.msra.gmra.mxu1 %vm190_vm2, %v2017_v46  ;;  %2963 = vmatprep.subr.mxu1 %v3159_v3 }
0x12fc   :  { %2953 = vmatpush3.msra.mxu0 %v3129_v13  ;;  %2964 = vmatpush3.msra.mxu1 %v3130_v14 }
0x12fd   :  { %2954 = vmatprep.subr.mxu0 %v3159_v3  ;;  %2965 = vmatprep.subr.mxu1 %v3159_v3 }
0x12fe   :  { %2955 = vmatpush3.msra.mxu0 %v3131_v15  ;;  %2966 = vmatpush3.msra.mxu1 %v3132_v16 }
0x12ff   :  { %2956 = vmatprep.subr.mxu0 %v3159_v3  ;;  %2967 = vmatprep.subr.mxu1 %v3159_v3 }
0x1300   :  { %2957 = vmatpush3.msra.mxu0 %v3133_v17  ;;  %2968 = vmatpush3.msra.mxu1 %v3134_v18  ;;  %v183_v17 = vld [vmem:[%s3816_s0 + $0x8] sm:$0xff]  ;;  %v184_v18 = vld [vmem:[%s3816_s0 + $0x10] sm:$0xff] }
0x1301   :  { %2958 = vmatprep.subr.mxu0 %v3159_v3  ;;  %2969 = vmatprep.subr.mxu1 %v3159_v3 }
0x1302   :  { %2970 = vmatpush3.msra.mxu1 %v3135_v19  ;;  %2971 = vmatprep.mubr.msk.f32.mxu1 %vm3160_vm1, %v3159_v3  ;;  %v186_v19 = vld [vmem:[%s3816_s0 + $0x20] sm:$0xff] }
0x1303   :  { %2959 = vmatpush3.msra.mxu0 %v3136_v20  ;;  %2960 = vmatprep.mubr.msk.f32.mxu0 %vm3160_vm1, %v3159_v3  ;;  %v188_v20 = vld [vmem:[%s3816_s0 + $0x30] sm:$0xff] }
0x1304   :  { %2974 = vmatprep.subr.mxu0 %v3159_v3 }
0x13b3   :  { %v2011_v22 = vpop.f32.mrf.mxu1 }
0x13b5   :  { %v2929_v23 = vpop.f32.mrf.mxu1 }
0x13ba   :  { %v2086_v47 = vpop.f32.mrf.mxu0 }
0x13bb   :  { %v2087_v26 = vadd.f32 %v2086_v47, %v2011_v22  ;;  %v2187_v27 = vpop.f32.mrf.mxu1 }
0x13bc   :  { %v2191_v31 = vadd.f32 %v3391_v48, %v2187_v27  ;;  %v2940_v35 = vpop.f32.mrf.mxu0  ;;  %v2399_v27 = vld [vmem:[%s3822_s6 + $0x10] sm:$0xff] }
0x13bd   :  { %3097 = vtanh.f32 %v2087_v26  ;;  %v2951_v36 = vpop.f32.mrf.mxu1  ;;  %v2551_v5 = vmul.f32 -1.442695, %v2087_v26  ;;  %v2400_v26 = vld [vmem:[%s3822_s6 + $0x18] sm:$0xff]  ;;  %v2397_v35 = vld [vmem:[%s3822_s6] sm:$0xff] }
0x13be   :  { %3099 = vtanh.f32 %v2191_v31  ;;  %v2553_v7 = vmul.f32 -1.442695, %v2191_v31  ;;  %v2398_v31 = vld [vmem:[%s3822_s6 + $0x8] sm:$0xff] }
0x13bf   :  { %3101 = vpow2.f32 %v2551_v5 }
0x13c0   :  { %3103 = vpow2.f32 %v2553_v7 }
0x13ca   :  { %v3098_v37 = vpop.eup %3097 }
0x13cb   :  { %v3100_v39 = vpop.eup %3099  ;;  %2099 = vrot.lane.b32.xlu0 %v3098_v37, %s3161_s20 }
0x13cc   :  { %2201 = vrot.lane.b32.xlu1 %v3100_v39, %s3161_s20  ;;  %v3102_v8 = vpop.eup %3101 }
0x13cd   :  { %v3104_v24 = vpop.eup %3103  ;;  %v2093_v25 = vadd.f32 1.0, %v3102_v8 }
0x13ce   :  { %v2195_v28 = vadd.f32 1.0, %v3104_v24 }
0x13cf   :  { %3105 = vrcp.f32 %v2093_v25 }
0x13d0   :  { %3107 = vrcp.f32 %v2195_v28 }
0x13dc   :  { %v3106_v48 = vpop.eup %3105 }
0x13dd   :  { %v3108_v30 = vpop.eup %3107  ;;  %v2097_v44 = vmul.f32 %v3106_v48, %v3670_v56 }
0x13de   :  { %v2199_v40 = vmul.f32 %v3108_v30, %v3674_v59 }
0x143d   :  { %v2100_v29 = vpop.permute.xlu0 %2099 }
0x143e   :  { %v2202_v33 = vpop.permute.xlu1 %2201  ;;  %v2102_v34 = vmul.f32 %v3106_v48, %v2100_v29 }
0x143f   :  { %v2204_v38 = vmul.f32 %v3108_v30, %v2202_v33 }
0x1440   :  { %2104 = vrot.lane.b32.xlu0 %v2102_v34, %s3162_s21 }
0x1441   :  { %2206 = vrot.lane.b32.xlu1 %v2204_v38, %s3162_s21 }
0x14b2   :  { %v2105_v41 = vpop.permute.xlu0 %2104 }
0x14b3   :  { %v2207_v42 = vpop.permute.xlu1 %2206  ;;  %v2107_v43 = vadd.f32 %v2105_v41, %v2097_v44 }
0x14b4   :  { %v2209_v51 = vadd.f32 %v2207_v42, %v2199_v40 }
0x14b5   :  { %3109 = vtanh.f32 %v2107_v43 }
0x14b6   :  { %3111 = vtanh.f32 %v2209_v51 }
0x14c2   :  { %v3110_v49 = vpop.eup %3109 }
0x14c3   :  { %v3112_v52 = vpop.eup %3111  ;;  %2110 = vrot.lane.b32.xlu0 %v3110_v49, %s3161_s20 }
0x14c4   :  { %2212 = vrot.lane.b32.xlu1 %v3112_v52, %s3161_s20 }
0x1535   :  { %v2111_v53 = vpop.permute.xlu0 %2110 }
0x1536   :  { %v2213_v54 = vpop.permute.xlu1 %2212  ;;  %v3747_v1 = vmul.f32 %v3106_v48, %v2111_v53 }
0x1537   :  { %v2215_v55 = vmul.f32 %v3108_v30, %v2213_v54 }
0x1538   :  { %2217 = vrot.lane.b32.xlu0 %v3747_v1, %s3162_s21 }
0x1539   :  { %2292 = vrot.lane.b32.xlu1 %v2215_v55, %s3162_s21 }
0x15aa   :  { %v2218_v45 = vpop.permute.xlu0 %2217 }
0x15ab   :  { %v2293_v56 = vpop.permute.xlu1 %2292  ;;  %2961 = vmatmul.mubr.msk.f32.vlgmr.msra.gmra.mxu0 %vm190_vm2, %v2218_v45 }
0x15ac   :  { %2972 = vmatmul.mubr.msk.f32.vlgmr.msra.gmra.mxu1 %vm190_vm2, %v2293_v56  ;;  %2982 = vmatprep.mubr.msk.f32.mxu0 %vm3160_vm1, %v3159_v3 }
0x15ad   :  { %2975 = vmatpush3.msra.mxu0 %v2400_v26 }
0x15ae   :  { %2976 = vmatprep.subr.mxu0 %v3159_v3 }
0x15af   :  { %2977 = vmatpush3.msra.mxu0 %v2399_v27 }
0x15b0   :  { %2978 = vmatprep.subr.mxu0 %v3159_v3 }
0x15b1   :  { %2979 = vmatpush3.msra.mxu0 %v2398_v31 }
0x15b2   :  { %2980 = vmatprep.subr.mxu0 %v3159_v3 }
0x15b3   :  { %2981 = vmatpush3.msra.mxu0 %v2397_v35 }
0x166b   :  { %v2287_v58 = vpop.f32.mrf.mxu0 }
0x166c   :  { %v2362_v59 = vpop.f32.mrf.mxu1 }
0x166d   :  { %v2363_v61 = vadd.f32 %v2362_v59, %v2287_v58  ;;  %v2962_v62 = vpop.f32.mrf.mxu0 }
0x166e   :  { %v2973_v63 = vpop.f32.mrf.mxu1 }
0x166f   :  { %3113 = vtanh.f32 %v2363_v61  ;;  %v2556_v46 = vmul.f32 -1.442695, %v2363_v61 }
0x1671   :  { %3115 = vpow2.f32 %v2556_v46 }
0x167c   :  { %v3114_v2 = vpop.eup %3113 }
0x167d   :  { %2375 = vrot.lane.b32.xlu0 %v3114_v2, %s3161_s20 }
0x167e   :  { %v3116_v12 = vpop.eup %3115 }
0x167f   :  { %v2369_v13 = vadd.f32 1.0, %v3116_v12 }
0x1681   :  { %460 = vperm.xlu0 %2991, %v182_v4   ;;  %3117 = vrcp.f32 %v2369_v13 }
0x1685   :  { %1288 = vperm.xlu0 %2991, %v185_v6  }
0x1689   :  { %1840 = vperm.xlu0 %2991, %v187_v9  }
0x168d   :  { %2392 = vperm.xlu0 %2991, %v189_v11  }
0x168e   :  { %v3118_v14 = vpop.eup %3117 }
0x168f   :  { %v2373_v22 = vmul.f32 %v3118_v14, %v2107_v43 }
0x16ef   :  { %v2376_v15 = vpop.permute.xlu0 %2375 }
0x16f0   :  { %v2378_v16 = vmul.f32 %v3118_v14, %v2376_v15 }
0x16f2   :  { %2380 = vrot.lane.b32.xlu1 %v2378_v16, %s3162_s21 }
0x16f6   :  { %736 = vperm.xlu1 %2992, %v183_v17  }
0x16fa   :  { %1012 = vperm.xlu1 %2992, %v184_v18  }
0x16fc   :  { %v461_v39 = vpop.permute.xlu0 %460 }
0x16fd   :  { %v463_v8 = vmul.f32 %v461_v39, %v3409_v21 }
0x16fe   :  { %1564 = vperm.xlu1 %2992, %v186_v19  }
0x1700   :  { %v1289_v28 = vpop.permute.xlu0 %1288 }
0x1701   :  { %v1291_v30 = vmul.f32 %v1289_v28, %v3568_v50 }
0x1702   :  { %2116 = vperm.xlu1 %2992, %v188_v20  }
0x1704   :  { %v1841_v34 = vpop.permute.xlu0 %1840 }
0x1705   :  { %v1843_v40 = vmul.f32 %v1841_v34, %v3679_v0 }
0x1764   :  { %v2381_v23 = vpop.permute.xlu1 %2380 }
0x1765   :  { %v2383_v47 = vadd.f32 %v2381_v23, %v2373_v22 }
0x1767   :  { %3119 = vtanh.f32 %v2383_v47 }
0x1771   :  { %v737_v37 = vpop.permute.xlu1 %736 }
0x1772   :  { %v739_v7 = vmul.f32 %v737_v37, %v3462_v10 }
0x1774   :  { %v3120_v36 = vpop.eup %3119  ;;  %v740_v25 = vadd.f32 %v739_v7, %v463_v8 }
0x1775   :  { %2386 = vrot.lane.b32.xlu1 %v3120_v36, %s3161_s20  ;;  %v1013_v5 = vpop.permute.xlu1 %1012 }
0x1776   :  { %v1015_v24 = vmul.f32 %v1013_v5, %v3515_v60  ;;  %v2393_v60 = vpop.permute.xlu0 %2392 }
0x1778   :  { %v1016_v48 = vadd.f32 %v1015_v24, %v740_v25 }
0x1779   :  { %v1565_v29 = vpop.permute.xlu1 %1564 }
0x177a   :  { %v1292_v33 = vadd.f32 %v1291_v30, %v1016_v48  ;;  %v1567_v3 = vmul.f32 %v1565_v29, %v3621_v32  ;;  %v2557_v32 = vld [vmem:[%s3823_s7] ss:$0 sm:$0xff] }
0x177c   :  { %v1568_v38 = vadd.f32 %v1567_v3, %v1292_v33 }
0x177d   :  { %v2117_v44 = vpop.permute.xlu1 %2116 }
0x177e   :  { %v1844_v41 = vadd.f32 %v1843_v40, %v1568_v38  ;;  %v2119_v10 = vmul.f32 %v2117_v44, %v3747_v1 }
0x1780   :  { %v2120_v43 = vadd.f32 %v2119_v10, %v1844_v41 }
0x17e7   :  { %v2387_v21 = vpop.permute.xlu1 %2386 }
0x17e8   :  { %v2389_v42 = vmul.f32 %v3118_v14, %v2387_v21 }
0x17ea   :  { %v2395_v51 = vmul.f32 %v2393_v60, %v2389_v42 }
0x17ec   :  { %v2396_v49 = vadd.f32 %v2395_v51, %v2120_v43 }
0x17ee   :  { %2409 = vrot.lane.b32.xlu0 %v2396_v49, %s3162_s21  ;;  %s3164_s21 = smov [#allocation2]  }
0x17ef   :  { %s2503_s7 = sshll.u32 %s3164_s21, 4  ;;  %s2504_s7 = int_to_ptr.vmem [resolvable:$true] %s2503_s7 }
0x17f0   :  { %s3137_s28 = scalar_lea.vmem %s2504_s7, 128  ;;  %p3142_p1 = scmp.lt.s32.totalorder %s2504_s7, %s2504_s7 }
0x17f1   :  { %p3138_p0 = scmp.ne.s32.totalorder %s2504_s7, %s3137_s28  ;;  %p3143_p2 = scmp.lt.s32.totalorder %s3137_s28, %s3137_s28 }
0x17f3   :  { %p3144_p3 = por %p3143_p2, %p3142_p1 }
0x17f5   :  { %p3145_p4 = pnand %p3144_p3, %p3138_p0 }
0x1860   :  { %v2410_v50 = vpop.permute.xlu0 %2409 }
0x1861   :  { %2983 = vmatmul.mubr.msk.f32.vlgmr.msra.gmra.mxu0 %vm190_vm2, %v2410_v50 }
0x1921   :  { %v2479_v52 = vpop.f32.mrf.mxu0 }
0x1922   :  { %v2480_v0 = vadd.f32 %v2557_v32, %v2479_v52 }
0x1923   :  { %v2984_v53 = vpop.f32.mrf.mxu0 }
0x1924   :  { %v2484_v54 = vsel %vm2483_vm3, %v2480_v0, -inf }
0x1925   :  { %2485 = vmax.xlane.f32.xlu1 %v2484_v54 }
0x19ae   :  { %v2486_v1 = vpop.xlane.xlu1 %2485 }
0x19af   :  { %v2487_v55 = vsub.f32 %v2480_v0, %v2486_v1 }
0x19b1   :  { %v2488_v45 = vmul.f32 1.442695, %v2487_v55 }
0x19b3   :  { %3121 = vpow2.f32 %v2488_v45 }
0x19c0   :  { %v3122_v56 = vpop.eup %3121 }
0x19c1   :  { %v2490_v57 = vsel %vm2483_vm3, %v3122_v56, 0.0 }
0x19c2   :  { %2491 = vadd.xlane.f32.xlu0 %v2490_v57 }
0x1a4b   :  { %v2492_v58 = vpop.xlane.xlu0 %2491 }
0x1a4c   :  { %3123 = vlog2.f32 %v2492_v58 }
0x1a59   :  { %v3124_v59 = vpop.eup %3123 }
0x1a5a   :  { %v2494_v61 = vmul.f32 0.6931472, %v3124_v59 }
0x1a5c   :  { %v2495_v62 = vsub.f32 %v2487_v55, %v2494_v61 }
0x1a5e   :  { %2496 = vst.msk [vmem:[#allocation2] sm:$0xff] %vm2483_vm3, %v2495_v62 }
0x1a5f   :  { %3148 = shalt.err (!%p3145_p4)
}
0x1a60   :  { %2506 = dma.vmem_to_hbm [thread:$0]  %s2504_s7, 128, %s3824_s8, [#allocation3]  }
0x1a61   :  { %3157 = dma.done.wait [#allocation3], 128  }
0x1a62   :  { %3158 = vsyncadd [#allocation3], 4294967168 }
0x1a63   :  { %2510 = vsyncpa [#allocation3], 1 }

</bundles_post_ra>
